<compile_context>
chip_gen: v5e
topology: v5e:2x2
jax: 0.10.0
libtpu: 0.0.40
codegen_flags: <defaults>
</compile_context>

<pallas_src>
import jax
import jax.numpy as jnp
from jax.experimental import pallas as pl
from jax.experimental.pallas import tpu as pltpu

STATE_DIM = 4
HIDDEN_DIM = 64
ACTION_DIM = 2
R = 32   # states interleaved per row -> fc1 K = R * STATE_DIM = 128 lanes


def policy_kernel(x_ref, w1_ref, b1_ref, w2_ref, b2_ref, o_ref):
    # fc1 for R interleaved states at once: (tile_rows, 128) @ (128, R*64) on the MXU,
    # f32 accumulation regardless of input dtype.
    h = jnp.dot(x_ref[...], w1_ref[...], preferred_element_type=jnp.float32)
    h = jnp.maximum(h + b1_ref[...], 0.0)                 # bias (1, R*64) broadcasts over sublanes
    # fc2 collapsed to per-action logit differences; block-diagonal +/- columns mean the
    # result comes out already interleaved as [d0(s0), d1(s0), d0(s1), d1(s1), ...].
    d = jnp.dot(h.astype(w2_ref.dtype), w2_ref[...],
                preferred_element_type=jnp.float32) + b2_ref[...]
    # 2-class softmax == sigmoid of the logit difference: pure VPU/EUP, no XLU reductions.
    # approx=False keeps the 1e-5 check; approx=True would push the divide onto the EUP.
    o_ref[...] = pl.reciprocal(1.0 + jnp.exp(-d), approx=False).astype(o_ref.dtype)


def policy_forward(x, w1, b1, w2, b2, *, tile_b=16384, input_dtype=jnp.float32):
    """x: (B, STATE_DIM) f32 row-major.
    w1: (STATE_DIM, HIDDEN_DIM), b1: (HIDDEN_DIM,),
    w2: (HIDDEN_DIM, ACTION_DIM), b2: (ACTION_DIM,)   (x @ w + b convention).
    Returns softmax probabilities of shape (B, ACTION_DIM), f32."""
    assert ACTION_DIM == 2, "2-class softmax is collapsed to a sigmoid"
    B = x.shape[0]

    # tile_b = batch elements per grid step; must be a multiple of 8 sublanes * R.
    row_align = 8 * R
    tile_b = max(row_align, (tile_b // row_align) * row_align)
    tile_b = min(tile_b, pl.cdiv(B, row_align) * row_align)
    Bp = pl.cdiv(B, tile_b) * tile_b
    if Bp != B:                                   # pad only when B doesn't divide evenly
        x = jnp.pad(x, ((0, Bp - B), (0, 0)))

    rows, tile_rows = Bp // R, tile_b // R

    # Metadata-only view: row r holds states 32r..32r+31, feature-interleaved.
    xr = x.astype(input_dtype).reshape(rows, R * STATE_DIM)

    # Block-diagonal fc1 weights consume the interleaved layout directly (K = 128).
    eye = jnp.eye(R, dtype=jnp.float32)
    w1_big = jnp.kron(eye, w1.astype(jnp.float32)).astype(input_dtype)        # (128, R*64)
    b1_big = jnp.tile(b1.astype(jnp.float32), R).reshape(1, R * HIDDEN_DIM)   # (1, R*64)
    # fc2 -> per-action logit differences; columns alternate action 0 / action 1.
    w2diff = jnp.stack([w2[:, 0] - w2[:, 1], w2[:, 1] - w2[:, 0]], axis=1)    # (64, 2)
    w2_big = jnp.kron(eye, w2diff.astype(jnp.float32)).astype(input_dtype)    # (R*64, 2R)
    b2_vec = jnp.tile(jnp.array([b2[0] - b2[1], b2[1] - b2[0]], jnp.float32),
                      R).reshape(1, ACTION_DIM * R)                           # (1, 2R)

    # 32 MiB covers the default tile on every generation; only very large v6e tiles
    # need more (128 MiB physical there).
    vmem_limit = 32 * 1024 * 1024 if tile_b <= 32768 else 64 * 1024 * 1024

    out = pl.pallas_call(
        policy_kernel,
        out_shape=jax.ShapeDtypeStruct((rows, ACTION_DIM * R), jnp.float32),
        grid=(rows // tile_rows,),
        in_specs=[
            pl.BlockSpec((tile_rows, R * STATE_DIM), lambda i: (i, 0)),        # x tile
            pl.BlockSpec((R * STATE_DIM, R * HIDDEN_DIM), lambda i: (0, 0)),   # W1 blockdiag (resident)
            pl.BlockSpec((1, R * HIDDEN_DIM), lambda i: (0, 0)),               # b1 (resident)
            pl.BlockSpec((R * HIDDEN_DIM, ACTION_DIM * R), lambda i: (0, 0)),  # W2 diff blockdiag
            pl.BlockSpec((1, ACTION_DIM * R), lambda i: (0, 0)),               # b2 diff vector
        ],
        out_specs=pl.BlockSpec((tile_rows, ACTION_DIM * R), lambda i: (i, 0)),
        compiler_params=pltpu.CompilerParams(
            dimension_semantics=("parallel",),   # shard batch tiles across TCs (v7x)
            vmem_limit_bytes=vmem_limit,
        ),
    )(xr, w1_big, b1_big, w2_big, b2_vec)

    probs = out.reshape(Bp, ACTION_DIM)          # metadata-only reshape back to (B, 2)
    return probs if Bp == B else probs[:B]


def init_params(key):
    k1, k2, k3, k4 = jax.random.split(key, 4)
    # Deterministic synthetic init (uniform, roughly matching nn.Linear's scale).
    bound1 = 1.0 / (STATE_DIM ** 0.5)
    bound2 = 1.0 / (HIDDEN_DIM ** 0.5)
    w1 = jax.random.uniform(k1, (STATE_DIM, HIDDEN_DIM), jnp.float32, -bound1, bound1)
    b1 = jax.random.uniform(k2, (HIDDEN_DIM,), jnp.float32, -bound1, bound1)
    w2 = jax.random.uniform(k3, (HIDDEN_DIM, ACTION_DIM), jnp.float32, -bound2, bound2)
    b2 = jax.random.uniform(k4, (ACTION_DIM,), jnp.float32, -bound2, bound2)
    return w1, b1, w2, b2


if __name__ == "__main__":
    key = jax.random.PRNGKey(0)
    kx, kp = jax.random.split(key)

    # Small but representative batch; tile_b=256 -> grid of 2 steps (exercises the
    # pipeline and the "parallel" batch axis).  Production use: leave tile_b at its
    # large default and batch many environment states per call.
    B = 512
    x = jax.random.normal(kx, (B, STATE_DIM), jnp.float32)
    w1, b1, w2, b2 = init_params(kp)

    out = policy_forward(x, w1, b1, w2, b2, tile_b=256)
    out = jax.block_until_ready(out)

    # Reference check in plain JAX (original module semantics).
    h_ref = jnp.maximum(x @ w1 + b1, 0.0)
    logits_ref = h_ref @ w2 + b2
    probs_ref = jax.nn.softmax(logits_ref, axis=-1)
    assert out.shape == (B, ACTION_DIM)
    assert jnp.allclose(out, probs_ref, atol=1e-5, rtol=1e-5)
    assert jnp.allclose(jnp.sum(out, axis=-1), 1.0, atol=1e-5)

    # Non-divisible batch exercises the padding path.
    B2 = 300
    out2 = jax.block_until_ready(policy_forward(x[:B2], w1, b1, w2, b2, tile_b=256))
    assert out2.shape == (B2, ACTION_DIM)
    assert jnp.allclose(out2, probs_ref[:B2], atol=1e-5, rtol=1e-5)

    # Optional bf16-input path (halves x/W1 HBM traffic); tolerance re-baselined
    # because bf16 quantization exceeds 1e-5 vs. the f32 reference.
    out_bf16 = jax.block_until_ready(
        policy_forward(x, w1, b1, w2, b2, tile_b=256, input_dtype=jnp.bfloat16))
    assert out_bf16.shape == (B, ACTION_DIM)
    assert jnp.allclose(out_bf16, probs_ref, atol=3e-2)

    print("KERNEL_OK")
</pallas_src>

<mosaic_0001>
module attributes {stable_mosaic.version = 11 : i64} {
  func.func @policy_kernel(%arg0: i32, %arg1: memref<8x128xf32, #tpu.memory_space<vmem>>, %arg2: memref<128x2048xf32, #tpu.memory_space<vmem>>, %arg3: memref<1x2048xf32, #tpu.memory_space<vmem>>, %arg4: memref<2048x64xf32, #tpu.memory_space<vmem>>, %arg5: memref<1x64xf32, #tpu.memory_space<vmem>>, %arg6: memref<8x64xf32, #tpu.memory_space<vmem>>) attributes {dimension_semantics = [#tpu.dimension_semantics<parallel>], iteration_bounds = array<i64: 2>, scalar_prefetch = 0 : i64, scratch_operands = 0 : i64, tpu.core_type = #tpu.core_type<tc>, window_params = [{transform_indices = @transform_0, window_bounds = array<i64: 8, 128>}, {pipeline_mode = #tpu.pipeline_mode<synchronous>, transform_indices = @transform_1, window_bounds = array<i64: 128, 2048>}, {pipeline_mode = #tpu.pipeline_mode<synchronous>, transform_indices = @transform_2, window_bounds = array<i64: 1, 2048>}, {pipeline_mode = #tpu.pipeline_mode<synchronous>, transform_indices = @transform_3, window_bounds = array<i64: 2048, 64>}, {pipeline_mode = #tpu.pipeline_mode<synchronous>, transform_indices = @transform_4, window_bounds = array<i64: 1, 64>}, {transform_indices = @transform_5, window_bounds = array<i64: 8, 64>}]} {
    %c0 = arith.constant 0 : index
    %c0_0 = arith.constant 0 : index
    %0 = vector.load %arg1[%c0, %c0_0] : memref<8x128xf32, #tpu.memory_space<vmem>>, vector<8x128xf32>
    %c0_1 = arith.constant 0 : index
    %c0_2 = arith.constant 0 : index
    %1 = vector.load %arg2[%c0_1, %c0_2] : memref<128x2048xf32, #tpu.memory_space<vmem>>, vector<128x2048xf32>
    %cst = arith.constant dense<0.000000e+00> : vector<8x2048xf32>
    %2 = tpu.matmul %0, %1, %cst {dimension_numbers = #tpu.dot_dimension_numbers<[1], [0], [0], [1], [0, 0, 1, 1], [], []>} : vector<8x128xf32>, vector<128x2048xf32>, vector<8x2048xf32> -> vector<8x2048xf32>
    %c0_3 = arith.constant 0 : index
    %c0_4 = arith.constant 0 : index
    %3 = vector.load %arg3[%c0_3, %c0_4] : memref<1x2048xf32, #tpu.memory_space<vmem>>, vector<1x2048xf32>
    %4 = vector.broadcast %3 : vector<1x2048xf32> to vector<8x2048xf32>
    %5 = arith.addf %2, %4 : vector<8x2048xf32>
    %cst_5 = arith.constant 0.000000e+00 : f32
    %6 = vector.broadcast %cst_5 : f32 to vector<8x2048xf32>
    %7 = arith.maximumf %5, %6 : vector<8x2048xf32>
    %c0_6 = arith.constant 0 : index
    %c0_7 = arith.constant 0 : index
    %8 = vector.load %arg4[%c0_6, %c0_7] : memref<2048x64xf32, #tpu.memory_space<vmem>>, vector<2048x64xf32>
    %cst_8 = arith.constant dense<0.000000e+00> : vector<8x64xf32>
    %9 = tpu.matmul %7, %8, %cst_8 {dimension_numbers = #tpu.dot_dimension_numbers<[1], [0], [0], [1], [0, 0, 1, 1], [], []>} : vector<8x2048xf32>, vector<2048x64xf32>, vector<8x64xf32> -> vector<8x64xf32>
    %c0_9 = arith.constant 0 : index
    %c0_10 = arith.constant 0 : index
    %10 = vector.load %arg5[%c0_9, %c0_10] : memref<1x64xf32, #tpu.memory_space<vmem>>, vector<1x64xf32>
    %11 = vector.broadcast %10 : vector<1x64xf32> to vector<8x64xf32>
    %12 = arith.addf %9, %11 : vector<8x64xf32>
    %cst_11 = arith.constant 0.000000e+00 : f32
    %13 = vector.broadcast %cst_11 : f32 to vector<8x64xf32>
    %14 = arith.subf %13, %12 : vector<8x64xf32>
    %15 = math.exp %14 : vector<8x64xf32>
    %cst_12 = arith.constant 1.000000e+00 : f32
    %16 = vector.broadcast %cst_12 : f32 to vector<8x64xf32>
    %17 = arith.addf %16, %15 : vector<8x64xf32>
    %18 = tpu.reciprocal %17 : vector<8x64xf32> -> vector<8x64xf32>
    %c0_13 = arith.constant 0 : index
    %c0_14 = arith.constant 0 : index
    %19 = vector.load %arg6[%c0_13, %c0_14] : memref<8x64xf32, #tpu.memory_space<vmem>>, vector<8x64xf32>
    tpu.vector_store %arg6[%c0_13, %c0_14], %18 {strides = array<i32>} : memref<8x64xf32, #tpu.memory_space<vmem>>, vector<8x64xf32>,
    return
  }
  func.func @transform_0(%arg0: i32) -> (i32, i32) {
    %c0_i32 = arith.constant 0 : i32
    %c0_i32_0 = arith.constant 0 : i32
    return %arg0, %c0_i32 : i32, i32
  }
  func.func @transform_1(%arg0: i32) -> (i32, i32) {
    %c0_i32 = arith.constant 0 : i32
    %c0_i32_0 = arith.constant 0 : i32
    %c0_i32_1 = arith.constant 0 : i32
    return %c0_i32, %c0_i32_0 : i32, i32
  }
  func.func @transform_2(%arg0: i32) -> (i32, i32) {
    %c0_i32 = arith.constant 0 : i32
    %c0_i32_0 = arith.constant 0 : i32
    %c0_i32_1 = arith.constant 0 : i32
    return %c0_i32, %c0_i32_0 : i32, i32
  }
  func.func @transform_3(%arg0: i32) -> (i32, i32) {
    %c0_i32 = arith.constant 0 : i32
    %c0_i32_0 = arith.constant 0 : i32
    %c0_i32_1 = arith.constant 0 : i32
    return %c0_i32, %c0_i32_0 : i32, i32
  }
  func.func @transform_4(%arg0: i32) -> (i32, i32) {
    %c0_i32 = arith.constant 0 : i32
    %c0_i32_0 = arith.constant 0 : i32
    %c0_i32_1 = arith.constant 0 : i32
    return %c0_i32, %c0_i32_0 : i32, i32
  }
  func.func @transform_5(%arg0: i32) -> (i32, i32) {
    %c0_i32 = arith.constant 0 : i32
    %c0_i32_0 = arith.constant 0 : i32
    return %arg0, %c0_i32 : i32, i32
  }
}

</mosaic_0001>

<bundles_post_ra>
// kernel: tpu_custom_call.1
= control target key start
LH: loop header
LB: loop body
LE: loop exit
PB: predicated region body
PF: predicated region fallthrough
CT: control target
= control target key end

     0   :  { %10 = vsyncpa [#allocation3], 0  ;;  %s3345_s0 = inlined_call_operand.vmem [shape: f32[16,128], index: 0, kind: input, shape index: {}]   ;;  %s3346_s1 = inlined_call_operand.vmem [shape: f32[128,2048], index: 1, kind: input, shape index: {}]   ;;  %s3347_s2 = inlined_call_operand.vmem [shape: f32[1,2048], index: 2, kind: input, shape index: {}]   ;;  %s3348_s3 = inlined_call_operand.vmem [shape: f32[2048,64], index: 3, kind: input, shape index: {}]   ;;  %s3349_s4 = inlined_call_operand.vmem [shape: f32[1,64], index: 4, kind: input, shape index: {}]   ;;  %s3350_s5 = inlined_call_operand.hbm [shape: f32[16,64], index: 5, kind: output, shape index: {}]  }
   0x1   :  { %12 = vsyncpa [#allocation3 + $0x1], 0  ;;  %s1672_s18 = smov 0   ;;  %s1674_s19 = smov 0  }
   0x2   :  { %s1676_s20 = smov 0   ;;  %s1678_s21 = smov 0  }
   0x3 LB: > { %s1693_s22 = sadd.s32 4294967295, %s1640_s21   ;;  %s1524_s23 = sadd.s32 4294967294, %s1640_s21   ;;  %s1640_s21 = sphi %s1678_s21, %s3356_s21   ;;  %s1636_s20 = sphi %s1676_s20, %s3355_s20   ;;  %s1632_s19 = sphi %s1674_s19, %s3354_s19   ;;  %s1628_s18 = sphi %s1672_s18, %s3353_s18  }
   0x4   : > { %s1697_s24 = sadd.s32 1, %s1640_s21   ;;  %s135_s25 = sadd.s32 1, %s1636_s20 }
   0x5   : > { %s132_s26 = ssub.s32 %s1640_s21, %s1697_s24  ;;  %p145_p0 = scmp.ne.s32.totalorder %s1636_s20, %s1632_s19 }
   0x6   : > { %p133_p1 = scmp.eq.s32.totalorder %s132_s26, 0  ;;  %p146_p2 = scmp.eq.s32.totalorder %s1693_s22, 1 }
   0x7   : > { %p151_p3 = scmp.ne.s32.totalorder %s1632_s19, %s1628_s18  ;;  %p152_p4 = scmp.eq.s32.totalorder %s1524_s23, 1 }
   0x8   : > { %s1708_s27 = scalar_select %p133_p1, %s1636_s20, %s135_s25  }
   0x9   : > { %p1710_p5 = por %p146_p2, %p145_p0  ;;  %p1714_p6 = por %p152_p4, %p151_p3 }
   0xa   : > { %p1527_p7 = scmp.ge.s32.totalorder %s1640_s21, 1  ;;  %p189_p8 = scmp.lt.s32.totalorder %s1640_s21, 3 }
   0xc   : > { %p190_p9 = pnand %p1527_p7, %p189_p8 }
   0xd   : > { %p216_p10 = scmp.lt.s32.totalorder (!%p190_p9), %s1693_s22, 1  ;;  %s213_s23 = sand.u32 (!%p190_p9), 1, %s1632_s19  }
   0xe   : > { %193 = sbr.rel (%p190_p9) target bundleno = 461 (0x1cd), region = 40  ;;  %s1528_s25 = sshll.u32 (!%p190_p9), %s213_s23, 3 }
   0xf   : > { %s1531_s26 = sshll.u32 (!%p190_p9), %s1693_s22, 3  ;;  %s1598_s16 = scalar_lea.hbm (!%p190_p9), %s3350_s5, 16 }
  0x10   : > { %s1460_s7 = scalar_lea.hbm (!%p190_p9), %s3350_s5, %s1531_s26 }
  0x11   : > { %s1464_s8 = sshll.u32 (!%p190_p9), %s1460_s7, 4  ;;  %s1465_s8 = int_to_ptr.hbm [resolvable:$true] %s1464_s8 }
  0x12   : > { %s1592_s9 = sshra.s32 (!%p190_p9), %s1465_s8, 4  ;;  %s1593_s9 = int_to_ptr.hbm [resolvable:$true] %s1592_s9 }
  0x13   : > { %v461_v0 = vld [vmem:[%s3346_s1 + $0x780] sm:$0xff]  ;;  %v463_v1 = vld [vmem:[%s3346_s1 + $0x790] sm:$0xff]  ;;  %v462_v3 = vld [vmem:[%s3346_s1 + $0x788] sm:$0xff]  ;;  %s2048_s13 = scalar_select %p216_p10, %s1693_s22, 1  ;;  %vm1447_vm3 = vcmask 523264  }
  0x14   : > { %v445_v2 = vld [vmem:[%s3346_s1 + $0x700] sm:$0xff]  ;;  %513 = vmatpush.msra.mxu0 %v461_v0  ;;  %553 = vmatpush.msra.mxu2 %v463_v1  ;;  %v447_v4 = vld [vmem:[%s3346_s1 + $0x710] sm:$0xff]  ;;  %v464_v5 = vld [vmem:[%s3346_s1 + $0x798] sm:$0xff]  ;;  %s1450_s22 = scalar_lea.sflag [#allocation3], %s213_s23  ;;  %s1594_s10 = scalar_lea.hbm %s1593_s9, 8 }
  0x15   : > { %533 = vmatpush.msra.mxu1 %v462_v3  ;;  %573 = vmatpush.msra.mxu3 %v464_v5  ;;  %v429_v6 = vld [vmem:[%s3346_s1 + $0x680] sm:$0xff]  ;;  %v446_v7 = vld [vmem:[%s3346_s1 + $0x708] sm:$0xff]  ;;  %v431_v8 = vld [vmem:[%s3346_s1 + $0x690] sm:$0xff]  ;;  %s1529_s15 = sshll.u32 %s2048_s13, 3  ;;  %p1595_p11 = scmp.ne.s32.totalorder %s1593_s9, %s1594_s10 }
  0x16   : > { %514 = vmatpush.msra.mxu0 %v445_v2  ;;  %554 = vmatpush.msra.mxu2 %v447_v4  ;;  %v448_v9 = vld [vmem:[%s3346_s1 + $0x718] sm:$0xff]  ;;  %v430_v10 = vld [vmem:[%s3346_s1 + $0x688] sm:$0xff]  ;;  %v413_v11 = vld [vmem:[%s3346_s1 + $0x600] sm:$0xff]  ;;  %s219_s14 = scalar_lea.vmem %s3345_s0, %s1529_s15  ;;  %s215_s15 = scalar_lea.vmem [#allocation2], %s1528_s25 }
  0x17   : > { %534 = vmatpush.msra.mxu1 %v446_v7  ;;  %574 = vmatpush.msra.mxu3 %v448_v9  ;;  %v415_v12 = vld [vmem:[%s3346_s1 + $0x610] sm:$0xff]  ;;  %v432_v13 = vld [vmem:[%s3346_s1 + $0x698] sm:$0xff]  ;;  %v414_v14 = vld [vmem:[%s3346_s1 + $0x608] sm:$0xff]  ;;  %s1462_s13 = sshll.u32 %s215_s15, 4  ;;  %p1596_p12 = pnand %p1595_p11, %p1710_p5  ;;  %s1463_s13 = int_to_ptr.vmem [resolvable:$true] %s1462_s13 }
  0x18   : > { %515 = vmatpush.msra.mxu0 %v429_v6  ;;  %555 = vmatpush.msra.mxu2 %v431_v8  ;;  %v416_v15 = vld [vmem:[%s3346_s1 + $0x618] sm:$0xff]  ;;  %v397_v16 = vld [vmem:[%s3346_s1 + $0x580] sm:$0xff]  ;;  %v399_v17 = vld [vmem:[%s3346_s1 + $0x590] sm:$0xff]  ;;  %p1599_p0 = scmp.lt.s32.totalorder %s1593_s9, %s3350_s5  ;;  %p1600_p1 = scmp.lt.s32.totalorder %s1598_s16, %s1594_s10 }
  0x19   : > { %535 = vmatpush.msra.mxu1 %v430_v10  ;;  %575 = vmatpush.msra.mxu3 %v432_v13  ;;  %v398_v18 = vld [vmem:[%s3346_s1 + $0x588] sm:$0xff]  ;;  %v400_v19 = vld [vmem:[%s3346_s1 + $0x598] sm:$0xff]  ;;  %v381_v20 = vld [vmem:[%s3346_s1 + $0x500] sm:$0xff]  ;;  %p1597_p13 = pneg %p1596_p12 }
  0x1a   : > { %516 = vmatpush.msra.mxu0 %v413_v11  ;;  %556 = vmatpush.msra.mxu2 %v415_v12  ;;  %v383_v21 = vld [vmem:[%s3346_s1 + $0x510] sm:$0xff]  ;;  %v382_v22 = vld [vmem:[%s3346_s1 + $0x508] sm:$0xff]  ;;  %v384_v23 = vld [vmem:[%s3346_s1 + $0x518] sm:$0xff]  ;;  %p1601_p2 = por %p1600_p1, %p1599_p0 }
  0x1b   : > { %536 = vmatpush.msra.mxu1 %v414_v14  ;;  %576 = vmatpush.msra.mxu3 %v416_v15  ;;  %v365_v24 = vld [vmem:[%s3346_s1 + $0x480] sm:$0xff]  ;;  %v367_v25 = vld [vmem:[%s3346_s1 + $0x490] sm:$0xff]  ;;  %v366_v26 = vld [vmem:[%s3346_s1 + $0x488] sm:$0xff] }
  0x1c   : > { %517 = vmatpush.msra.mxu0 %v397_v16  ;;  %557 = vmatpush.msra.mxu2 %v399_v17  ;;  %v368_v27 = vld [vmem:[%s3346_s1 + $0x498] sm:$0xff]  ;;  %v349_v28 = vld [vmem:[%s3346_s1 + $0x400] sm:$0xff]  ;;  %v351_v29 = vld [vmem:[%s3346_s1 + $0x410] sm:$0xff]  ;;  %p1602_p3 = pnand %p1601_p2, %p1597_p13 }
  0x1d   : > { %537 = vmatpush.msra.mxu1 %v398_v18  ;;  %577 = vmatpush.msra.mxu3 %v400_v19  ;;  %v350_v30 = vld [vmem:[%s3346_s1 + $0x408] sm:$0xff]  ;;  %v352_v31 = vld [vmem:[%s3346_s1 + $0x418] sm:$0xff]  ;;  %v333_v32 = vld [vmem:[%s3346_s1 + $0x380] sm:$0xff] }
  0x1e   : > { %518 = vmatpush.msra.mxu0 %v381_v20  ;;  %558 = vmatpush.msra.mxu2 %v383_v21  ;;  %v335_v33 = vld [vmem:[%s3346_s1 + $0x390] sm:$0xff]  ;;  %v334_v34 = vld [vmem:[%s3346_s1 + $0x388] sm:$0xff]  ;;  %v336_v35 = vld [vmem:[%s3346_s1 + $0x398] sm:$0xff] }
  0x1f   : > { %538 = vmatpush.msra.mxu1 %v382_v22  ;;  %578 = vmatpush.msra.mxu3 %v384_v23  ;;  %v317_v36 = vld [vmem:[%s3346_s1 + $0x300] sm:$0xff]  ;;  %v319_v37 = vld [vmem:[%s3346_s1 + $0x310] sm:$0xff]  ;;  %v318_v38 = vld [vmem:[%s3346_s1 + $0x308] sm:$0xff] }
  0x20   : > { %519 = vmatpush.msra.mxu0 %v365_v24  ;;  %559 = vmatpush.msra.mxu2 %v367_v25  ;;  %v320_v39 = vld [vmem:[%s3346_s1 + $0x318] sm:$0xff]  ;;  %v301_v40 = vld [vmem:[%s3346_s1 + $0x280] sm:$0xff]  ;;  %v303_v41 = vld [vmem:[%s3346_s1 + $0x290] sm:$0xff] }
  0x21   : > { %539 = vmatpush.msra.mxu1 %v366_v26  ;;  %579 = vmatpush.msra.mxu3 %v368_v27  ;;  %v302_v42 = vld [vmem:[%s3346_s1 + $0x288] sm:$0xff]  ;;  %v304_v43 = vld [vmem:[%s3346_s1 + $0x298] sm:$0xff]  ;;  %v285_v44 = vld [vmem:[%s3346_s1 + $0x200] sm:$0xff] }
  0x22   : > { %520 = vmatpush.msra.mxu0 %v349_v28  ;;  %560 = vmatpush.msra.mxu2 %v351_v29  ;;  %v287_v45 = vld [vmem:[%s3346_s1 + $0x210] sm:$0xff]  ;;  %v286_v46 = vld [vmem:[%s3346_s1 + $0x208] sm:$0xff]  ;;  %v288_v47 = vld [vmem:[%s3346_s1 + $0x218] sm:$0xff] }
  0x23   : > { %540 = vmatpush.msra.mxu1 %v350_v30  ;;  %580 = vmatpush.msra.mxu3 %v352_v31  ;;  %v269_v48 = vld [vmem:[%s3346_s1 + $0x180] sm:$0xff]  ;;  %v271_v49 = vld [vmem:[%s3346_s1 + $0x190] sm:$0xff]  ;;  %v270_v50 = vld [vmem:[%s3346_s1 + $0x188] sm:$0xff] }
  0x24   : > { %521 = vmatpush.msra.mxu0 %v333_v32  ;;  %561 = vmatpush.msra.mxu2 %v335_v33  ;;  %v272_v51 = vld [vmem:[%s3346_s1 + $0x198] sm:$0xff]  ;;  %v253_v52 = vld [vmem:[%s3346_s1 + $0x100] sm:$0xff]  ;;  %v255_v53 = vld [vmem:[%s3346_s1 + $0x110] sm:$0xff] }
  0x25   : > { %541 = vmatpush.msra.mxu1 %v334_v34  ;;  %581 = vmatpush.msra.mxu3 %v336_v35  ;;  %v254_v54 = vld [vmem:[%s3346_s1 + $0x108] sm:$0xff]  ;;  %v256_v55 = vld [vmem:[%s3346_s1 + $0x118] sm:$0xff]  ;;  %v237_v56 = vld [vmem:[%s3346_s1 + $0x80] sm:$0xff] }
  0x26   : > { %522 = vmatpush.msra.mxu0 %v317_v36  ;;  %562 = vmatpush.msra.mxu2 %v319_v37  ;;  %v239_v57 = vld [vmem:[%s3346_s1 + $0x90] sm:$0xff]  ;;  %v238_v58 = vld [vmem:[%s3346_s1 + $0x88] sm:$0xff]  ;;  %v240_v59 = vld [vmem:[%s3346_s1 + $0x98] sm:$0xff] }
  0x27   : > { %542 = vmatpush.msra.mxu1 %v318_v38  ;;  %582 = vmatpush.msra.mxu3 %v320_v39  ;;  %v221_v60 = vld [vmem:[%s3346_s1] sm:$0xff]  ;;  %v223_v61 = vld [vmem:[%s3346_s1 + $0x10] sm:$0xff]  ;;  %v222_v0 = vld [vmem:[%s3346_s1 + $0x8] sm:$0xff] }
  0x28   : > { %523 = vmatpush.msra.mxu0 %v301_v40  ;;  %563 = vmatpush.msra.mxu2 %v303_v41  ;;  %v465_v62 = vld [vmem:[%s3346_s1 + $0x7a0] sm:$0xff]  ;;  %v467_v63 = vld [vmem:[%s3346_s1 + $0x7b0] sm:$0xff]  ;;  %v224_v1 = vld [vmem:[%s3346_s1 + $0x18] sm:$0xff] }
  0x29   : > { %543 = vmatpush.msra.mxu1 %v302_v42  ;;  %583 = vmatpush.msra.mxu3 %v304_v43  ;;  %v449_v2 = vld [vmem:[%s3346_s1 + $0x720] sm:$0xff]  ;;  %v466_v3 = vld [vmem:[%s3346_s1 + $0x7a8] sm:$0xff]  ;;  %v451_v4 = vld [vmem:[%s3346_s1 + $0x730] sm:$0xff] }
  0x2a   : > { %524 = vmatpush.msra.mxu0 %v285_v44  ;;  %564 = vmatpush.msra.mxu2 %v287_v45  ;;  %v468_v5 = vld [vmem:[%s3346_s1 + $0x7b8] sm:$0xff]  ;;  %v433_v6 = vld [vmem:[%s3346_s1 + $0x6a0] sm:$0xff]  ;;  %v450_v7 = vld [vmem:[%s3346_s1 + $0x728] sm:$0xff] }
  0x2b   : > { %544 = vmatpush.msra.mxu1 %v286_v46  ;;  %584 = vmatpush.msra.mxu3 %v288_v47  ;;  %v435_v8 = vld [vmem:[%s3346_s1 + $0x6b0] sm:$0xff]  ;;  %v452_v9 = vld [vmem:[%s3346_s1 + $0x738] sm:$0xff]  ;;  %v417_v10 = vld [vmem:[%s3346_s1 + $0x620] sm:$0xff] }
  0x2c   : > { %525 = vmatpush.msra.mxu0 %v269_v48  ;;  %565 = vmatpush.msra.mxu2 %v271_v49  ;;  %v434_v11 = vld [vmem:[%s3346_s1 + $0x6a8] sm:$0xff]  ;;  %v419_v12 = vld [vmem:[%s3346_s1 + $0x630] sm:$0xff]  ;;  %v436_v13 = vld [vmem:[%s3346_s1 + $0x6b8] sm:$0xff] }
  0x2d   : > { %545 = vmatpush.msra.mxu1 %v270_v50  ;;  %585 = vmatpush.msra.mxu3 %v272_v51  ;;  %v401_v14 = vld [vmem:[%s3346_s1 + $0x5a0] sm:$0xff]  ;;  %v418_v15 = vld [vmem:[%s3346_s1 + $0x628] sm:$0xff]  ;;  %v403_v16 = vld [vmem:[%s3346_s1 + $0x5b0] sm:$0xff] }
  0x2e   : > { %526 = vmatpush.msra.mxu0 %v253_v52  ;;  %566 = vmatpush.msra.mxu2 %v255_v53  ;;  %v420_v17 = vld [vmem:[%s3346_s1 + $0x638] sm:$0xff]  ;;  %v385_v18 = vld [vmem:[%s3346_s1 + $0x520] sm:$0xff]  ;;  %v402_v19 = vld [vmem:[%s3346_s1 + $0x5a8] sm:$0xff] }
  0x2f   : > { %546 = vmatpush.msra.mxu1 %v254_v54  ;;  %586 = vmatpush.msra.mxu3 %v256_v55  ;;  %v387_v20 = vld [vmem:[%s3346_s1 + $0x530] sm:$0xff]  ;;  %v404_v21 = vld [vmem:[%s3346_s1 + $0x5b8] sm:$0xff]  ;;  %v369_v22 = vld [vmem:[%s3346_s1 + $0x4a0] sm:$0xff] }
  0x30   : > { %527 = vmatpush.msra.mxu0 %v237_v56  ;;  %567 = vmatpush.msra.mxu2 %v239_v57  ;;  %v386_v23 = vld [vmem:[%s3346_s1 + $0x528] sm:$0xff]  ;;  %v371_v24 = vld [vmem:[%s3346_s1 + $0x4b0] sm:$0xff]  ;;  %v388_v25 = vld [vmem:[%s3346_s1 + $0x538] sm:$0xff] }
  0x31   : > { %547 = vmatpush.msra.mxu1 %v238_v58  ;;  %587 = vmatpush.msra.mxu3 %v240_v59  ;;  %v353_v26 = vld [vmem:[%s3346_s1 + $0x420] sm:$0xff]  ;;  %v370_v27 = vld [vmem:[%s3346_s1 + $0x4a8] sm:$0xff]  ;;  %v355_v28 = vld [vmem:[%s3346_s1 + $0x430] sm:$0xff] }
  0x32   : > { %528 = vmatpush.msra.mxu0 %v221_v60  ;;  %568 = vmatpush.msra.mxu2 %v223_v61  ;;  %v372_v29 = vld [vmem:[%s3346_s1 + $0x4b8] sm:$0xff]  ;;  %v337_v30 = vld [vmem:[%s3346_s1 + $0x3a0] sm:$0xff]  ;;  %v354_v31 = vld [vmem:[%s3346_s1 + $0x428] sm:$0xff] }
  0x33   : > { %548 = vmatpush.msra.mxu1 %v222_v0  ;;  %588 = vmatpush.msra.mxu3 %v224_v1  ;;  %v339_v32 = vld [vmem:[%s3346_s1 + $0x3b0] sm:$0xff]  ;;  %v356_v33 = vld [vmem:[%s3346_s1 + $0x438] sm:$0xff]  ;;  %v321_v34 = vld [vmem:[%s3346_s1 + $0x320] sm:$0xff] }
  0x34   : > { %593 = vmatpush.msrb.mxu0 %v465_v62  ;;  %633 = vmatpush.msrb.mxu2 %v467_v63  ;;  %v338_v35 = vld [vmem:[%s3346_s1 + $0x3a8] sm:$0xff]  ;;  %v323_v36 = vld [vmem:[%s3346_s1 + $0x330] sm:$0xff]  ;;  %v340_v37 = vld [vmem:[%s3346_s1 + $0x3b8] sm:$0xff] }
  0x35   : > { %613 = vmatpush.msrb.mxu1 %v466_v3  ;;  %653 = vmatpush.msrb.mxu3 %v468_v5  ;;  %v305_v38 = vld [vmem:[%s3346_s1 + $0x2a0] sm:$0xff]  ;;  %v322_v39 = vld [vmem:[%s3346_s1 + $0x328] sm:$0xff]  ;;  %v307_v40 = vld [vmem:[%s3346_s1 + $0x2b0] sm:$0xff] }
  0x36   : > { %594 = vmatpush.msrb.mxu0 %v449_v2  ;;  %634 = vmatpush.msrb.mxu2 %v451_v4  ;;  %v324_v41 = vld [vmem:[%s3346_s1 + $0x338] sm:$0xff]  ;;  %v289_v42 = vld [vmem:[%s3346_s1 + $0x220] sm:$0xff]  ;;  %v306_v43 = vld [vmem:[%s3346_s1 + $0x2a8] sm:$0xff] }
  0x37   : > { %614 = vmatpush.msrb.mxu1 %v450_v7  ;;  %654 = vmatpush.msrb.mxu3 %v452_v9  ;;  %v291_v44 = vld [vmem:[%s3346_s1 + $0x230] sm:$0xff]  ;;  %v308_v45 = vld [vmem:[%s3346_s1 + $0x2b8] sm:$0xff]  ;;  %v273_v46 = vld [vmem:[%s3346_s1 + $0x1a0] sm:$0xff] }
  0x38   : > { %595 = vmatpush.msrb.mxu0 %v433_v6  ;;  %635 = vmatpush.msrb.mxu2 %v435_v8  ;;  %v290_v47 = vld [vmem:[%s3346_s1 + $0x228] sm:$0xff]  ;;  %v275_v48 = vld [vmem:[%s3346_s1 + $0x1b0] sm:$0xff]  ;;  %v292_v49 = vld [vmem:[%s3346_s1 + $0x238] sm:$0xff] }
  0x39   : > { %615 = vmatpush.msrb.mxu1 %v434_v11  ;;  %655 = vmatpush.msrb.mxu3 %v436_v13  ;;  %v257_v50 = vld [vmem:[%s3346_s1 + $0x120] sm:$0xff]  ;;  %v274_v51 = vld [vmem:[%s3346_s1 + $0x1a8] sm:$0xff]  ;;  %v259_v52 = vld [vmem:[%s3346_s1 + $0x130] sm:$0xff] }
  0x3a   : > { %596 = vmatpush.msrb.mxu0 %v417_v10  ;;  %636 = vmatpush.msrb.mxu2 %v419_v12  ;;  %v276_v53 = vld [vmem:[%s3346_s1 + $0x1b8] sm:$0xff]  ;;  %v241_v54 = vld [vmem:[%s3346_s1 + $0xa0] sm:$0xff]  ;;  %v258_v55 = vld [vmem:[%s3346_s1 + $0x128] sm:$0xff] }
  0x3b   : > { %616 = vmatpush.msrb.mxu1 %v418_v15  ;;  %656 = vmatpush.msrb.mxu3 %v420_v17  ;;  %v243_v56 = vld [vmem:[%s3346_s1 + $0xb0] sm:$0xff]  ;;  %v260_v57 = vld [vmem:[%s3346_s1 + $0x138] sm:$0xff]  ;;  %v225_v58 = vld [vmem:[%s3346_s1 + $0x20] sm:$0xff] }
  0x3c   : > { %597 = vmatpush.msrb.mxu0 %v401_v14  ;;  %637 = vmatpush.msrb.mxu2 %v403_v16  ;;  %v242_v59 = vld [vmem:[%s3346_s1 + $0xa8] sm:$0xff]  ;;  %v227_v60 = vld [vmem:[%s3346_s1 + $0x30] sm:$0xff]  ;;  %v244_v61 = vld [vmem:[%s3346_s1 + $0xb8] sm:$0xff] }
  0x3d   : > { %617 = vmatpush.msrb.mxu1 %v402_v19  ;;  %657 = vmatpush.msrb.mxu3 %v404_v21  ;;  %v2108_v62 = vld [vmem:[%s219_s14] sm:$0xff]  ;;  %v471_v0 = vld [vmem:[%s3346_s1 + $0x7d0] sm:$0xff]  ;;  %v226_v1 = vld [vmem:[%s3346_s1 + $0x28] sm:$0xff] }
  0x3e   : > { %598 = vmatpush.msrb.mxu0 %v385_v18  ;;  %638 = vmatpush.msrb.mxu2 %v387_v20  ;;  %v469_v63 = vld [vmem:[%s3346_s1 + $0x7c0] sm:$0xff]  ;;  %v228_v2 = vld [vmem:[%s3346_s1 + $0x38] sm:$0xff]  ;;  %v470_v4 = vld [vmem:[%s3346_s1 + $0x7c8] sm:$0xff] }
  0x3f   : > { %618 = vmatpush.msrb.mxu1 %v386_v23  ;;  %658 = vmatpush.msrb.mxu3 %v388_v25  ;;  %v453_v3 = vld [vmem:[%s3346_s1 + $0x740] sm:$0xff]  ;;  %v455_v5 = vld [vmem:[%s3346_s1 + $0x750] sm:$0xff]  ;;  %v472_v6 = vld [vmem:[%s3346_s1 + $0x7d8] sm:$0xff] }
  0x40   : > { %599 = vmatpush.msrb.mxu0 %v369_v22  ;;  %639 = vmatpush.msrb.mxu2 %v371_v24  ;;  %v437_v7 = vld [vmem:[%s3346_s1 + $0x6c0] sm:$0xff]  ;;  %v454_v8 = vld [vmem:[%s3346_s1 + $0x748] sm:$0xff]  ;;  %v439_v9 = vld [vmem:[%s3346_s1 + $0x6d0] sm:$0xff] }
  0x41   : > { %619 = vmatpush.msrb.mxu1 %v370_v27  ;;  %659 = vmatpush.msrb.mxu3 %v372_v29  ;;  %v456_v10 = vld [vmem:[%s3346_s1 + $0x758] sm:$0xff]  ;;  %v421_v11 = vld [vmem:[%s3346_s1 + $0x640] sm:$0xff]  ;;  %v438_v12 = vld [vmem:[%s3346_s1 + $0x6c8] sm:$0xff] }
  0x42   : > { %600 = vmatpush.msrb.mxu0 %v353_v26  ;;  %640 = vmatpush.msrb.mxu2 %v355_v28  ;;  %v423_v13 = vld [vmem:[%s3346_s1 + $0x650] sm:$0xff]  ;;  %v440_v14 = vld [vmem:[%s3346_s1 + $0x6d8] sm:$0xff]  ;;  %v405_v15 = vld [vmem:[%s3346_s1 + $0x5c0] sm:$0xff] }
  0x43   : > { %620 = vmatpush.msrb.mxu1 %v354_v31  ;;  %660 = vmatpush.msrb.mxu3 %v356_v33  ;;  %v422_v16 = vld [vmem:[%s3346_s1 + $0x648] sm:$0xff]  ;;  %v407_v17 = vld [vmem:[%s3346_s1 + $0x5d0] sm:$0xff]  ;;  %v424_v18 = vld [vmem:[%s3346_s1 + $0x658] sm:$0xff] }
  0x44   : > { %601 = vmatpush.msrb.mxu0 %v337_v30  ;;  %641 = vmatpush.msrb.mxu2 %v339_v32  ;;  %v389_v19 = vld [vmem:[%s3346_s1 + $0x540] sm:$0xff]  ;;  %v406_v20 = vld [vmem:[%s3346_s1 + $0x5c8] sm:$0xff]  ;;  %v391_v21 = vld [vmem:[%s3346_s1 + $0x550] sm:$0xff] }
  0x45   : > { %621 = vmatpush.msrb.mxu1 %v338_v35  ;;  %661 = vmatpush.msrb.mxu3 %v340_v37  ;;  %v408_v22 = vld [vmem:[%s3346_s1 + $0x5d8] sm:$0xff]  ;;  %v373_v23 = vld [vmem:[%s3346_s1 + $0x4c0] sm:$0xff]  ;;  %v390_v24 = vld [vmem:[%s3346_s1 + $0x548] sm:$0xff] }
  0x46   : > { %602 = vmatpush.msrb.mxu0 %v321_v34  ;;  %642 = vmatpush.msrb.mxu2 %v323_v36  ;;  %v375_v25 = vld [vmem:[%s3346_s1 + $0x4d0] sm:$0xff]  ;;  %v392_v26 = vld [vmem:[%s3346_s1 + $0x558] sm:$0xff]  ;;  %v357_v27 = vld [vmem:[%s3346_s1 + $0x440] sm:$0xff] }
  0x47   : > { %622 = vmatpush.msrb.mxu1 %v322_v39  ;;  %662 = vmatpush.msrb.mxu3 %v324_v41  ;;  %v374_v28 = vld [vmem:[%s3346_s1 + $0x4c8] sm:$0xff]  ;;  %v359_v29 = vld [vmem:[%s3346_s1 + $0x450] sm:$0xff]  ;;  %v376_v30 = vld [vmem:[%s3346_s1 + $0x4d8] sm:$0xff] }
  0x48   : > { %603 = vmatpush.msrb.mxu0 %v305_v38  ;;  %643 = vmatpush.msrb.mxu2 %v307_v40  ;;  %v358_v31 = vld [vmem:[%s3346_s1 + $0x448] sm:$0xff]  ;;  %v341_v32 = vld [vmem:[%s3346_s1 + $0x3c0] sm:$0xff]  ;;  %v343_v33 = vld [vmem:[%s3346_s1 + $0x3d0] sm:$0xff] }
  0x49   : > { %623 = vmatpush.msrb.mxu1 %v306_v43  ;;  %663 = vmatpush.msrb.mxu3 %v308_v45  ;;  %v360_v34 = vld [vmem:[%s3346_s1 + $0x458] sm:$0xff]  ;;  %v325_v35 = vld [vmem:[%s3346_s1 + $0x340] sm:$0xff]  ;;  %v342_v36 = vld [vmem:[%s3346_s1 + $0x3c8] sm:$0xff] }
  0x4a   : > { %604 = vmatpush.msrb.mxu0 %v289_v42  ;;  %644 = vmatpush.msrb.mxu2 %v291_v44  ;;  %v327_v37 = vld [vmem:[%s3346_s1 + $0x350] sm:$0xff]  ;;  %v344_v38 = vld [vmem:[%s3346_s1 + $0x3d8] sm:$0xff]  ;;  %v309_v39 = vld [vmem:[%s3346_s1 + $0x2c0] sm:$0xff] }
  0x4b   : > { %624 = vmatpush.msrb.mxu1 %v290_v47  ;;  %664 = vmatpush.msrb.mxu3 %v292_v49  ;;  %v326_v40 = vld [vmem:[%s3346_s1 + $0x348] sm:$0xff]  ;;  %v311_v41 = vld [vmem:[%s3346_s1 + $0x2d0] sm:$0xff]  ;;  %v328_v42 = vld [vmem:[%s3346_s1 + $0x358] sm:$0xff] }
  0x4c   : > { %605 = vmatpush.msrb.mxu0 %v273_v46  ;;  %645 = vmatpush.msrb.mxu2 %v275_v48  ;;  %v293_v43 = vld [vmem:[%s3346_s1 + $0x240] sm:$0xff]  ;;  %v310_v44 = vld [vmem:[%s3346_s1 + $0x2c8] sm:$0xff]  ;;  %v295_v45 = vld [vmem:[%s3346_s1 + $0x250] sm:$0xff] }
  0x4d   : > { %625 = vmatpush.msrb.mxu1 %v274_v51  ;;  %665 = vmatpush.msrb.mxu3 %v276_v53  ;;  %v312_v46 = vld [vmem:[%s3346_s1 + $0x2d8] sm:$0xff]  ;;  %v277_v47 = vld [vmem:[%s3346_s1 + $0x1c0] sm:$0xff]  ;;  %v294_v48 = vld [vmem:[%s3346_s1 + $0x248] sm:$0xff] }
  0x4e   : > { %606 = vmatpush.msrb.mxu0 %v257_v50  ;;  %646 = vmatpush.msrb.mxu2 %v259_v52  ;;  %v279_v49 = vld [vmem:[%s3346_s1 + $0x1d0] sm:$0xff]  ;;  %v296_v50 = vld [vmem:[%s3346_s1 + $0x258] sm:$0xff]  ;;  %v261_v51 = vld [vmem:[%s3346_s1 + $0x140] sm:$0xff] }
  0x4f   : > { %626 = vmatpush.msrb.mxu1 %v258_v55  ;;  %666 = vmatpush.msrb.mxu3 %v260_v57  ;;  %v278_v52 = vld [vmem:[%s3346_s1 + $0x1c8] sm:$0xff]  ;;  %v263_v53 = vld [vmem:[%s3346_s1 + $0x150] sm:$0xff]  ;;  %v245_v55 = vld [vmem:[%s3346_s1 + $0xc0] sm:$0xff] }
  0x50   : > { %607 = vmatpush.msrb.mxu0 %v241_v54  ;;  %647 = vmatpush.msrb.mxu2 %v243_v56  ;;  %v280_v54 = vld [vmem:[%s3346_s1 + $0x1d8] sm:$0xff]  ;;  %v262_v56 = vld [vmem:[%s3346_s1 + $0x148] sm:$0xff]  ;;  %v247_v57 = vld [vmem:[%s3346_s1 + $0xd0] sm:$0xff] }
  0x51   : > { %627 = vmatpush.msrb.mxu1 %v242_v59  ;;  %667 = vmatpush.msrb.mxu3 %v244_v61  ;;  %v229_v59 = vld [vmem:[%s3346_s1 + $0x40] sm:$0xff]  ;;  %v231_v61 = vld [vmem:[%s3346_s1 + $0x50] sm:$0xff] }
  0x52   : > { %608 = vmatpush.msrb.mxu0 %v225_v58  ;;  %648 = vmatpush.msrb.mxu2 %v227_v60  ;;  %v264_v58 = vld [vmem:[%s3346_s1 + $0x158] sm:$0xff]  ;;  %v246_v60 = vld [vmem:[%s3346_s1 + $0xc8] sm:$0xff] }
  0x53   : > { %529 = vmatmul.f32.vlgmr.msra.gmra.mxu0 %v2108_v62  ;;  %569 = vmatmul.f32.vlgmr.msra.gmra.mxu2 %v2108_v62 }
  0x54   : > { %673 = vmatpush.msra.mxu0 %v469_v63  ;;  %713 = vmatpush.msra.mxu2 %v471_v0  ;;  %v248_v63 = vld [vmem:[%s3346_s1 + $0xd8] sm:$0xff]  ;;  %v473_v0 = vld [vmem:[%s3346_s1 + $0x7e0] sm:$0xff] }
  0x55   : > { %628 = vmatpush.msrb.mxu1 %v226_v1  ;;  %668 = vmatpush.msrb.mxu3 %v228_v2  ;;  %v475_v1 = vld [vmem:[%s3346_s1 + $0x7f0] sm:$0xff]  ;;  %v230_v2 = vld [vmem:[%s3346_s1 + $0x48] sm:$0xff] }
  0x56   : > { %549 = vmatmul.f32.vlgmr.msra.gmra.mxu1 %v2108_v62  ;;  %589 = vmatmul.f32.vlgmr.msra.gmra.mxu3 %v2108_v62 }
  0x57   : > { %674 = vmatpush.msra.mxu0 %v453_v3  ;;  %693 = vmatpush.msra.mxu1 %v470_v4  ;;  %v232_v3 = vld [vmem:[%s3346_s1 + $0x58] sm:$0xff]  ;;  %v457_v4 = vld [vmem:[%s3346_s1 + $0x760] sm:$0xff] }
  0x58   : > { %714 = vmatpush.msra.mxu2 %v455_v5  ;;  %733 = vmatpush.msra.mxu3 %v472_v6  ;;  %v474_v5 = vld [vmem:[%s3346_s1 + $0x7e8] sm:$0xff]  ;;  %v459_v6 = vld [vmem:[%s3346_s1 + $0x770] sm:$0xff] }
  0x59   : > { %675 = vmatpush.msra.mxu0 %v437_v7  ;;  %694 = vmatpush.msra.mxu1 %v454_v8  ;;  %v476_v7 = vld [vmem:[%s3346_s1 + $0x7f8] sm:$0xff]  ;;  %v441_v8 = vld [vmem:[%s3346_s1 + $0x6e0] sm:$0xff] }
  0x5a   : > { %715 = vmatpush.msra.mxu2 %v439_v9  ;;  %734 = vmatpush.msra.mxu3 %v456_v10  ;;  %v458_v9 = vld [vmem:[%s3346_s1 + $0x768] sm:$0xff]  ;;  %v443_v10 = vld [vmem:[%s3346_s1 + $0x6f0] sm:$0xff] }
  0x5b   : > { %676 = vmatpush.msra.mxu0 %v421_v11  ;;  %695 = vmatpush.msra.mxu1 %v438_v12  ;;  %v460_v11 = vld [vmem:[%s3346_s1 + $0x778] sm:$0xff]  ;;  %v425_v12 = vld [vmem:[%s3346_s1 + $0x660] sm:$0xff] }
  0x5c   : > { %716 = vmatpush.msra.mxu2 %v423_v13  ;;  %735 = vmatpush.msra.mxu3 %v440_v14  ;;  %v442_v13 = vld [vmem:[%s3346_s1 + $0x6e8] sm:$0xff]  ;;  %v427_v14 = vld [vmem:[%s3346_s1 + $0x670] sm:$0xff] }
  0x5d   : > { %649 = vmatmul.f32.vlgmr.msrb.gmra.mxu2 %v2108_v62  ;;  %677 = vmatpush.msra.mxu0 %v405_v15  ;;  %v444_v15 = vld [vmem:[%s3346_s1 + $0x6f8] sm:$0xff] }
  0x5e   : > { %696 = vmatpush.msra.mxu1 %v422_v16  ;;  %717 = vmatpush.msra.mxu2 %v407_v17  ;;  %v409_v16 = vld [vmem:[%s3346_s1 + $0x5e0] sm:$0xff]  ;;  %v426_v17 = vld [vmem:[%s3346_s1 + $0x668] sm:$0xff] }
  0x5f   : > { %736 = vmatpush.msra.mxu3 %v424_v18  ;;  %678 = vmatpush.msra.mxu0 %v389_v19  ;;  %v411_v18 = vld [vmem:[%s3346_s1 + $0x5f0] sm:$0xff]  ;;  %v428_v19 = vld [vmem:[%s3346_s1 + $0x678] sm:$0xff] }
  0x60   : > { %669 = vmatmul.f32.vlgmr.msrb.gmra.mxu3 %v2108_v62  ;;  %697 = vmatpush.msra.mxu1 %v406_v20  ;;  %v393_v20 = vld [vmem:[%s3346_s1 + $0x560] sm:$0xff] }
  0x61   : > { %718 = vmatpush.msra.mxu2 %v391_v21  ;;  %737 = vmatpush.msra.mxu3 %v408_v22  ;;  %v410_v21 = vld [vmem:[%s3346_s1 + $0x5e8] sm:$0xff]  ;;  %v395_v22 = vld [vmem:[%s3346_s1 + $0x570] sm:$0xff] }
  0x62   : > { %679 = vmatpush.msra.mxu0 %v373_v23  ;;  %698 = vmatpush.msra.mxu1 %v390_v24  ;;  %v412_v23 = vld [vmem:[%s3346_s1 + $0x5f8] sm:$0xff]  ;;  %v377_v24 = vld [vmem:[%s3346_s1 + $0x4e0] sm:$0xff] }
  0x63   : > { %719 = vmatpush.msra.mxu2 %v375_v25  ;;  %738 = vmatpush.msra.mxu3 %v392_v26  ;;  %v394_v25 = vld [vmem:[%s3346_s1 + $0x568] sm:$0xff]  ;;  %v379_v26 = vld [vmem:[%s3346_s1 + $0x4f0] sm:$0xff] }
  0x64   : > { %680 = vmatpush.msra.mxu0 %v357_v27  ;;  %699 = vmatpush.msra.mxu1 %v374_v28  ;;  %v396_v27 = vld [vmem:[%s3346_s1 + $0x578] sm:$0xff]  ;;  %v361_v28 = vld [vmem:[%s3346_s1 + $0x460] sm:$0xff] }
  0x65   : > { %720 = vmatpush.msra.mxu2 %v359_v29  ;;  %739 = vmatpush.msra.mxu3 %v376_v30  ;;  %v378_v29 = vld [vmem:[%s3346_s1 + $0x4e8] sm:$0xff]  ;;  %v363_v30 = vld [vmem:[%s3346_s1 + $0x470] sm:$0xff] }
  0x66   : > { %609 = vmatmul.f32.vlgmr.msrb.gmra.mxu0 %v2108_v62  ;;  %700 = vmatpush.msra.mxu1 %v358_v31  ;;  %v380_v31 = vld [vmem:[%s3346_s1 + $0x4f8] sm:$0xff] }
  0x67   : > { %681 = vmatpush.msra.mxu0 %v341_v32  ;;  %721 = vmatpush.msra.mxu2 %v343_v33  ;;  %v345_v32 = vld [vmem:[%s3346_s1 + $0x3e0] sm:$0xff]  ;;  %v362_v33 = vld [vmem:[%s3346_s1 + $0x468] sm:$0xff] }
  0x68   : > { %740 = vmatpush.msra.mxu3 %v360_v34  ;;  %629 = vmatmul.f32.vlgmr.msrb.gmra.mxu1 %v2108_v62  ;;  %v347_v34 = vld [vmem:[%s3346_s1 + $0x3f0] sm:$0xff] }
  0x69   : > { %682 = vmatpush.msra.mxu0 %v325_v35  ;;  %701 = vmatpush.msra.mxu1 %v342_v36  ;;  %v364_v35 = vld [vmem:[%s3346_s1 + $0x478] sm:$0xff]  ;;  %v329_v36 = vld [vmem:[%s3346_s1 + $0x360] sm:$0xff] }
  0x6a   : > { %722 = vmatpush.msra.mxu2 %v327_v37  ;;  %741 = vmatpush.msra.mxu3 %v344_v38  ;;  %v346_v37 = vld [vmem:[%s3346_s1 + $0x3e8] sm:$0xff]  ;;  %v331_v38 = vld [vmem:[%s3346_s1 + $0x370] sm:$0xff] }
  0x6b   : > { %683 = vmatpush.msra.mxu0 %v309_v39  ;;  %702 = vmatpush.msra.mxu1 %v326_v40  ;;  %v348_v39 = vld [vmem:[%s3346_s1 + $0x3f8] sm:$0xff]  ;;  %v313_v40 = vld [vmem:[%s3346_s1 + $0x2e0] sm:$0xff] }
  0x6c   : > { %723 = vmatpush.msra.mxu2 %v311_v41  ;;  %742 = vmatpush.msra.mxu3 %v328_v42  ;;  %v330_v41 = vld [vmem:[%s3346_s1 + $0x368] sm:$0xff]  ;;  %v315_v42 = vld [vmem:[%s3346_s1 + $0x2f0] sm:$0xff] }
  0x6d   : > { %684 = vmatpush.msra.mxu0 %v293_v43  ;;  %703 = vmatpush.msra.mxu1 %v310_v44  ;;  %v332_v43 = vld [vmem:[%s3346_s1 + $0x378] sm:$0xff]  ;;  %v297_v44 = vld [vmem:[%s3346_s1 + $0x260] sm:$0xff] }
  0x6e   : > { %724 = vmatpush.msra.mxu2 %v295_v45  ;;  %743 = vmatpush.msra.mxu3 %v312_v46  ;;  %v314_v45 = vld [vmem:[%s3346_s1 + $0x2e8] sm:$0xff]  ;;  %v299_v46 = vld [vmem:[%s3346_s1 + $0x270] sm:$0xff] }
  0x6f   : > { %685 = vmatpush.msra.mxu0 %v277_v47  ;;  %704 = vmatpush.msra.mxu1 %v294_v48  ;;  %v316_v47 = vld [vmem:[%s3346_s1 + $0x2f8] sm:$0xff]  ;;  %v281_v48 = vld [vmem:[%s3346_s1 + $0x1e0] sm:$0xff] }
  0x70   : > { %725 = vmatpush.msra.mxu2 %v279_v49  ;;  %744 = vmatpush.msra.mxu3 %v296_v50  ;;  %v298_v49 = vld [vmem:[%s3346_s1 + $0x268] sm:$0xff]  ;;  %v283_v50 = vld [vmem:[%s3346_s1 + $0x1f0] sm:$0xff] }
  0x71   : > { %686 = vmatpush.msra.mxu0 %v261_v51  ;;  %705 = vmatpush.msra.mxu1 %v278_v52  ;;  %v300_v51 = vld [vmem:[%s3346_s1 + $0x278] sm:$0xff]  ;;  %v265_v52 = vld [vmem:[%s3346_s1 + $0x160] sm:$0xff] }
  0x72   : > { %726 = vmatpush.msra.mxu2 %v263_v53  ;;  %745 = vmatpush.msra.mxu3 %v280_v54  ;;  %v282_v53 = vld [vmem:[%s3346_s1 + $0x1e8] sm:$0xff]  ;;  %v267_v54 = vld [vmem:[%s3346_s1 + $0x170] sm:$0xff] }
  0x73   : > { %687 = vmatpush.msra.mxu0 %v245_v55  ;;  %706 = vmatpush.msra.mxu1 %v262_v56  ;;  %v284_v55 = vld [vmem:[%s3346_s1 + $0x1f8] sm:$0xff]  ;;  %v249_v56 = vld [vmem:[%s3346_s1 + $0xe0] sm:$0xff] }
  0x74   : > { %727 = vmatpush.msra.mxu2 %v247_v57  ;;  %746 = vmatpush.msra.mxu3 %v264_v58  ;;  %v266_v57 = vld [vmem:[%s3346_s1 + $0x168] sm:$0xff]  ;;  %v251_v58 = vld [vmem:[%s3346_s1 + $0xf0] sm:$0xff] }
  0x75   : > { %688 = vmatpush.msra.mxu0 %v229_v59  ;;  %707 = vmatpush.msra.mxu1 %v246_v60  ;;  %v268_v59 = vld [vmem:[%s3346_s1 + $0x178] sm:$0xff]  ;;  %v233_v60 = vld [vmem:[%s3346_s1 + $0x60] sm:$0xff] }
  0x76   : > { %728 = vmatpush.msra.mxu2 %v231_v61  ;;  %747 = vmatpush.msra.mxu3 %v248_v63  ;;  %v250_v61 = vld [vmem:[%s3346_s1 + $0xe8] sm:$0xff]  ;;  %v235_v63 = vld [vmem:[%s3346_s1 + $0x70] sm:$0xff] }
  0x77   : > { %689 = vmatmul.f32.vlgmr.msra.gmra.mxu0 %v2108_v62  ;;  %729 = vmatmul.f32.vlgmr.msra.gmra.mxu2 %v2108_v62 }
  0x78   : > { %753 = vmatpush.msrb.mxu0 %v473_v0  ;;  %793 = vmatpush.msrb.mxu2 %v475_v1  ;;  %v252_v0 = vld [vmem:[%s3346_s1 + $0xf8] sm:$0xff]  ;;  %v234_v1 = vld [vmem:[%s3346_s1 + $0x68] sm:$0xff] }
  0x79   : > { %708 = vmatpush.msra.mxu1 %v230_v2  ;;  %748 = vmatpush.msra.mxu3 %v232_v3  ;;  %v236_v2 = vld [vmem:[%s3346_s1 + $0x78] sm:$0xff] }
  0x7a   : > { %709 = vmatmul.f32.vlgmr.msra.gmra.mxu1 %v2108_v62  ;;  %749 = vmatmul.f32.vlgmr.msra.gmra.mxu3 %v2108_v62  ;;  %v864_v3 = vld [vmem:[%s3348_s3 + $0x78] sm:$0xff] }
  0x7b   : > { %754 = vmatpush.msrb.mxu0 %v457_v4  ;;  %773 = vmatpush.msrb.mxu1 %v474_v5  ;;  %v880_v4 = vld [vmem:[%s3348_s3 + $0xf8] sm:$0xff] }
  0x7c   : > { %794 = vmatpush.msrb.mxu2 %v459_v6  ;;  %813 = vmatpush.msrb.mxu3 %v476_v7  ;;  %v896_v5 = vld [vmem:[%s3348_s3 + $0x178] sm:$0xff]  ;;  %v863_v7 = vld [vmem:[%s3348_s3 + $0x70] sm:$0xff] }
  0x7d   : > { %755 = vmatpush.msrb.mxu0 %v441_v8  ;;  %774 = vmatpush.msrb.mxu1 %v458_v9  ;;  %v912_v6 = vld [vmem:[%s3348_s3 + $0x1f8] sm:$0xff]  ;;  %v879_v8 = vld [vmem:[%s3348_s3 + $0xf0] sm:$0xff] }
  0x7e   : > { %795 = vmatpush.msrb.mxu2 %v443_v10  ;;  %814 = vmatpush.msrb.mxu3 %v460_v11  ;;  %v895_v9 = vld [vmem:[%s3348_s3 + $0x170] sm:$0xff]  ;;  %v878_v11 = vld [vmem:[%s3348_s3 + $0xe8] sm:$0xff] }
  0x7f   : > { %756 = vmatpush.msrb.mxu0 %v425_v12  ;;  %775 = vmatpush.msrb.mxu1 %v442_v13  ;;  %v911_v10 = vld [vmem:[%s3348_s3 + $0x1f0] sm:$0xff]  ;;  %v894_v12 = vld [vmem:[%s3348_s3 + $0x168] sm:$0xff] }
  0x80   : > { %796 = vmatpush.msrb.mxu2 %v427_v14  ;;  %815 = vmatpush.msrb.mxu3 %v444_v15  ;;  %v910_v13 = vld [vmem:[%s3348_s3 + $0x1e8] sm:$0xff]  ;;  %v861_v14 = vld [vmem:[%s3348_s3 + $0x60] sm:$0xff] }
  0x81   : > { %757 = vmatpush.msrb.mxu0 %v409_v16  ;;  %776 = vmatpush.msrb.mxu1 %v426_v17  ;;  %v877_v15 = vld [vmem:[%s3348_s3 + $0xe0] sm:$0xff] }
  0x82   : > { %797 = vmatpush.msrb.mxu2 %v411_v18  ;;  %816 = vmatpush.msrb.mxu3 %v428_v19  ;;  %v893_v16 = vld [vmem:[%s3348_s3 + $0x160] sm:$0xff]  ;;  %v860_v18 = vld [vmem:[%s3348_s3 + $0x58] sm:$0xff] }
  0x83   : > { %758 = vmatpush.msrb.mxu0 %v393_v20  ;;  %777 = vmatpush.msrb.mxu1 %v410_v21  ;;  %v909_v17 = vld [vmem:[%s3348_s3 + $0x1e0] sm:$0xff]  ;;  %v876_v19 = vld [vmem:[%s3348_s3 + $0xd8] sm:$0xff] }
  0x84   : > { %798 = vmatpush.msrb.mxu2 %v395_v22  ;;  %817 = vmatpush.msrb.mxu3 %v412_v23  ;;  %v892_v20 = vld [vmem:[%s3348_s3 + $0x158] sm:$0xff]  ;;  %v859_v22 = vld [vmem:[%s3348_s3 + $0x50] sm:$0xff] }
  0x85   : > { %759 = vmatpush.msrb.mxu0 %v377_v24  ;;  %778 = vmatpush.msrb.mxu1 %v394_v25  ;;  %v908_v21 = vld [vmem:[%s3348_s3 + $0x1d8] sm:$0xff]  ;;  %v875_v23 = vld [vmem:[%s3348_s3 + $0xd0] sm:$0xff] }
  0x86   : > { %799 = vmatpush.msrb.mxu2 %v379_v26  ;;  %818 = vmatpush.msrb.mxu3 %v396_v27  ;;  %v891_v24 = vld [vmem:[%s3348_s3 + $0x150] sm:$0xff]  ;;  %v858_v26 = vld [vmem:[%s3348_s3 + $0x48] sm:$0xff] }
  0x87   : > { %760 = vmatpush.msrb.mxu0 %v361_v28  ;;  %779 = vmatpush.msrb.mxu1 %v378_v29  ;;  %v907_v25 = vld [vmem:[%s3348_s3 + $0x1d0] sm:$0xff]  ;;  %v874_v27 = vld [vmem:[%s3348_s3 + $0xc8] sm:$0xff] }
  0x88   : > { %800 = vmatpush.msrb.mxu2 %v363_v30  ;;  %819 = vmatpush.msrb.mxu3 %v380_v31  ;;  %v890_v28 = vld [vmem:[%s3348_s3 + $0x148] sm:$0xff]  ;;  %v857_v30 = vld [vmem:[%s3348_s3 + $0x40] sm:$0xff] }
  0x89   : > { %761 = vmatpush.msrb.mxu0 %v345_v32  ;;  %780 = vmatpush.msrb.mxu1 %v362_v33  ;;  %v906_v29 = vld [vmem:[%s3348_s3 + $0x1c8] sm:$0xff]  ;;  %v873_v31 = vld [vmem:[%s3348_s3 + $0xc0] sm:$0xff] }
  0x8a   : > { %801 = vmatpush.msrb.mxu2 %v347_v34  ;;  %820 = vmatpush.msrb.mxu3 %v364_v35  ;;  %v889_v32 = vld [vmem:[%s3348_s3 + $0x140] sm:$0xff]  ;;  %v856_v34 = vld [vmem:[%s3348_s3 + $0x38] sm:$0xff] }
  0x8b   : > { %762 = vmatpush.msrb.mxu0 %v329_v36  ;;  %781 = vmatpush.msrb.mxu1 %v346_v37  ;;  %v905_v33 = vld [vmem:[%s3348_s3 + $0x1c0] sm:$0xff]  ;;  %v872_v35 = vld [vmem:[%s3348_s3 + $0xb8] sm:$0xff] }
  0x8c   : > { %802 = vmatpush.msrb.mxu2 %v331_v38  ;;  %821 = vmatpush.msrb.mxu3 %v348_v39  ;;  %v888_v36 = vld [vmem:[%s3348_s3 + $0x138] sm:$0xff]  ;;  %v855_v38 = vld [vmem:[%s3348_s3 + $0x30] sm:$0xff] }
  0x8d   : > { %763 = vmatpush.msrb.mxu0 %v313_v40  ;;  %782 = vmatpush.msrb.mxu1 %v330_v41  ;;  %v904_v37 = vld [vmem:[%s3348_s3 + $0x1b8] sm:$0xff]  ;;  %v871_v39 = vld [vmem:[%s3348_s3 + $0xb0] sm:$0xff] }
  0x8e   : > { %803 = vmatpush.msrb.mxu2 %v315_v42  ;;  %822 = vmatpush.msrb.mxu3 %v332_v43  ;;  %v887_v40 = vld [vmem:[%s3348_s3 + $0x130] sm:$0xff]  ;;  %v854_v42 = vld [vmem:[%s3348_s3 + $0x28] sm:$0xff] }
  0x8f   : > { %764 = vmatpush.msrb.mxu0 %v297_v44  ;;  %783 = vmatpush.msrb.mxu1 %v314_v45  ;;  %v903_v41 = vld [vmem:[%s3348_s3 + $0x1b0] sm:$0xff]  ;;  %v870_v43 = vld [vmem:[%s3348_s3 + $0xa8] sm:$0xff] }
  0x90   : > { %804 = vmatpush.msrb.mxu2 %v299_v46  ;;  %823 = vmatpush.msrb.mxu3 %v316_v47  ;;  %v886_v44 = vld [vmem:[%s3348_s3 + $0x128] sm:$0xff]  ;;  %v853_v46 = vld [vmem:[%s3348_s3 + $0x20] sm:$0xff] }
  0x91   : > { %765 = vmatpush.msrb.mxu0 %v281_v48  ;;  %784 = vmatpush.msrb.mxu1 %v298_v49  ;;  %v902_v45 = vld [vmem:[%s3348_s3 + $0x1a8] sm:$0xff]  ;;  %v869_v47 = vld [vmem:[%s3348_s3 + $0xa0] sm:$0xff] }
  0x92   : > { %805 = vmatpush.msrb.mxu2 %v283_v50  ;;  %824 = vmatpush.msrb.mxu3 %v300_v51  ;;  %v885_v48 = vld [vmem:[%s3348_s3 + $0x120] sm:$0xff]  ;;  %v852_v50 = vld [vmem:[%s3348_s3 + $0x18] sm:$0xff] }
  0x93   : > { %766 = vmatpush.msrb.mxu0 %v265_v52  ;;  %785 = vmatpush.msrb.mxu1 %v282_v53  ;;  %v901_v49 = vld [vmem:[%s3348_s3 + $0x1a0] sm:$0xff]  ;;  %v868_v51 = vld [vmem:[%s3348_s3 + $0x98] sm:$0xff] }
  0x94   : > { %806 = vmatpush.msrb.mxu2 %v267_v54  ;;  %825 = vmatpush.msrb.mxu3 %v284_v55  ;;  %v884_v52 = vld [vmem:[%s3348_s3 + $0x118] sm:$0xff]  ;;  %v851_v54 = vld [vmem:[%s3348_s3 + $0x10] sm:$0xff] }
  0x95   : > { %767 = vmatpush.msrb.mxu0 %v249_v56  ;;  %786 = vmatpush.msrb.mxu1 %v266_v57  ;;  %v900_v53 = vld [vmem:[%s3348_s3 + $0x198] sm:$0xff]  ;;  %v867_v55 = vld [vmem:[%s3348_s3 + $0x90] sm:$0xff] }
  0x96   : > { %807 = vmatpush.msrb.mxu2 %v251_v58  ;;  %826 = vmatpush.msrb.mxu3 %v268_v59  ;;  %v883_v56 = vld [vmem:[%s3348_s3 + $0x110] sm:$0xff]  ;;  %v850_v58 = vld [vmem:[%s3348_s3 + $0x8] sm:$0xff] }
  0x97   : > { %768 = vmatpush.msrb.mxu0 %v233_v60  ;;  %787 = vmatpush.msrb.mxu1 %v250_v61  ;;  %v899_v57 = vld [vmem:[%s3348_s3 + $0x190] sm:$0xff]  ;;  %v866_v59 = vld [vmem:[%s3348_s3 + $0x88] sm:$0xff] }
  0x98   : > { %808 = vmatpush.msrb.mxu2 %v235_v63  ;;  %827 = vmatpush.msrb.mxu3 %v252_v0  ;;  %v882_v60 = vld [vmem:[%s3348_s3 + $0x108] sm:$0xff]  ;;  %v849_v63 = vld [vmem:[%s3348_s3] sm:$0xff] }
  0x99   : > { %769 = vmatmul.f32.vlgmr.msrb.gmra.mxu0 %v2108_v62  ;;  %809 = vmatmul.f32.vlgmr.msrb.gmra.mxu2 %v2108_v62  ;;  %v898_v61 = vld [vmem:[%s3348_s3 + $0x188] sm:$0xff]  ;;  %v865_v0 = vld [vmem:[%s3348_s3 + $0x80] sm:$0xff] }
  0x9a   : > { %788 = vmatpush.msrb.mxu1 %v234_v1  ;;  %828 = vmatpush.msrb.mxu3 %v236_v2  ;;  %v928_v1 = vld [vmem:[%s3348_s3 + $0x278] sm:$0xff] }
  0x9b   : > { %789 = vmatmul.f32.vlgmr.msrb.gmra.mxu1 %v2108_v62  ;;  %829 = vmatmul.f32.vlgmr.msrb.gmra.mxu3 %v2108_v62  ;;  %v862_v62 = vld [vmem:[%s3348_s3 + $0x68] sm:$0xff]  ;;  %v944_v2 = vld [vmem:[%s3348_s3 + $0x2f8] sm:$0xff] }
  0x9c   : > { %1109 = vmatpush.msra.mxu0 %v864_v3  ;;  %1129 = vmatpush.msra.mxu1 %v880_v4  ;;  %v881_v3 = vld [vmem:[%s3348_s3 + $0x100] sm:$0xff] }
  0x9d   : > { %1149 = vmatpush.msra.mxu2 %v896_v5  ;;  %1169 = vmatpush.msra.mxu3 %v912_v6  ;;  %v897_v4 = vld [vmem:[%s3348_s3 + $0x180] sm:$0xff]  ;;  %v927_v5 = vld [vmem:[%s3348_s3 + $0x270] sm:$0xff] }
  0x9e   : > { %1110 = vmatpush.msra.mxu0 %v863_v7  ;;  %1130 = vmatpush.msra.mxu1 %v879_v8  ;;  %v943_v6 = vld [vmem:[%s3348_s3 + $0x2f0] sm:$0xff]  ;;  %v960_v7 = vld [vmem:[%s3348_s3 + $0x378] sm:$0xff] }
  0x9f   : > { %1150 = vmatpush.msra.mxu2 %v895_v9  ;;  %1170 = vmatpush.msra.mxu3 %v911_v10  ;;  %v976_v8 = vld [vmem:[%s3348_s3 + $0x3f8] sm:$0xff]  ;;  %v926_v9 = vld [vmem:[%s3348_s3 + $0x268] sm:$0xff] }
  0xa0   : > { %1111 = vmatpush.msra.mxu0 %v862_v62  ;;  %1131 = vmatpush.msra.mxu1 %v878_v11  ;;  %v942_v10 = vld [vmem:[%s3348_s3 + $0x2e8] sm:$0xff]  ;;  %v959_v62 = vld [vmem:[%s3348_s3 + $0x370] sm:$0xff] }
  0xa1   : > { %1151 = vmatpush.msra.mxu2 %v894_v12  ;;  %1171 = vmatpush.msra.mxu3 %v910_v13  ;;  %v975_v11 = vld [vmem:[%s3348_s3 + $0x3f0] sm:$0xff]  ;;  %v925_v12 = vld [vmem:[%s3348_s3 + $0x260] sm:$0xff] }
  0xa2   : > { %1112 = vmatpush.msra.mxu0 %v861_v14  ;;  %1132 = vmatpush.msra.mxu1 %v877_v15  ;;  %v941_v13 = vld [vmem:[%s3348_s3 + $0x2e0] sm:$0xff]  ;;  %v958_v14 = vld [vmem:[%s3348_s3 + $0x368] sm:$0xff] }
  0xa3   : > { %1152 = vmatpush.msra.mxu2 %v893_v16  ;;  %1172 = vmatpush.msra.mxu3 %v909_v17  ;;  %v974_v15 = vld [vmem:[%s3348_s3 + $0x3e8] sm:$0xff]  ;;  %v924_v16 = vld [vmem:[%s3348_s3 + $0x258] sm:$0xff] }
  0xa4   : > { %1113 = vmatpush.msra.mxu0 %v860_v18  ;;  %1133 = vmatpush.msra.mxu1 %v876_v19  ;;  %v940_v17 = vld [vmem:[%s3348_s3 + $0x2d8] sm:$0xff]  ;;  %v957_v18 = vld [vmem:[%s3348_s3 + $0x360] sm:$0xff] }
  0xa5   : > { %1153 = vmatpush.msra.mxu2 %v892_v20  ;;  %1173 = vmatpush.msra.mxu3 %v908_v21  ;;  %v973_v19 = vld [vmem:[%s3348_s3 + $0x3e0] sm:$0xff]  ;;  %v923_v20 = vld [vmem:[%s3348_s3 + $0x250] sm:$0xff] }
  0xa6   : > { %1114 = vmatpush.msra.mxu0 %v859_v22  ;;  %1134 = vmatpush.msra.mxu1 %v875_v23  ;;  %v939_v21 = vld [vmem:[%s3348_s3 + $0x2d0] sm:$0xff]  ;;  %v956_v22 = vld [vmem:[%s3348_s3 + $0x358] sm:$0xff] }
  0xa7   : > { %1154 = vmatpush.msra.mxu2 %v891_v24  ;;  %1174 = vmatpush.msra.mxu3 %v907_v25  ;;  %v972_v23 = vld [vmem:[%s3348_s3 + $0x3d8] sm:$0xff]  ;;  %v922_v24 = vld [vmem:[%s3348_s3 + $0x248] sm:$0xff] }
  0xa8   : > { %1115 = vmatpush.msra.mxu0 %v858_v26  ;;  %1135 = vmatpush.msra.mxu1 %v874_v27  ;;  %v938_v25 = vld [vmem:[%s3348_s3 + $0x2c8] sm:$0xff]  ;;  %v955_v26 = vld [vmem:[%s3348_s3 + $0x350] sm:$0xff] }
  0xa9   : > { %1155 = vmatpush.msra.mxu2 %v890_v28  ;;  %1175 = vmatpush.msra.mxu3 %v906_v29  ;;  %v971_v27 = vld [vmem:[%s3348_s3 + $0x3d0] sm:$0xff]  ;;  %v921_v28 = vld [vmem:[%s3348_s3 + $0x240] sm:$0xff] }
  0xaa   : > { %1116 = vmatpush.msra.mxu0 %v857_v30  ;;  %1136 = vmatpush.msra.mxu1 %v873_v31  ;;  %v937_v29 = vld [vmem:[%s3348_s3 + $0x2c0] sm:$0xff]  ;;  %v954_v30 = vld [vmem:[%s3348_s3 + $0x348] sm:$0xff] }
  0xab   : > { %1156 = vmatpush.msra.mxu2 %v889_v32  ;;  %1176 = vmatpush.msra.mxu3 %v905_v33  ;;  %v970_v31 = vld [vmem:[%s3348_s3 + $0x3c8] sm:$0xff]  ;;  %v920_v32 = vld [vmem:[%s3348_s3 + $0x238] sm:$0xff] }
  0xac   : > { %1117 = vmatpush.msra.mxu0 %v856_v34  ;;  %1137 = vmatpush.msra.mxu1 %v872_v35  ;;  %v936_v33 = vld [vmem:[%s3348_s3 + $0x2b8] sm:$0xff]  ;;  %v953_v34 = vld [vmem:[%s3348_s3 + $0x340] sm:$0xff] }
  0xad   : > { %1157 = vmatpush.msra.mxu2 %v888_v36  ;;  %1177 = vmatpush.msra.mxu3 %v904_v37  ;;  %v969_v35 = vld [vmem:[%s3348_s3 + $0x3c0] sm:$0xff]  ;;  %v919_v36 = vld [vmem:[%s3348_s3 + $0x230] sm:$0xff] }
  0xae   : > { %1118 = vmatpush.msra.mxu0 %v855_v38  ;;  %1138 = vmatpush.msra.mxu1 %v871_v39  ;;  %v935_v37 = vld [vmem:[%s3348_s3 + $0x2b0] sm:$0xff]  ;;  %v2819_v38 = vld [vmem:[%s3347_s2] sm:$0xff]  ;;  %v952_v39 = vld [vmem:[%s3348_s3 + $0x338] sm:$0xff] }
  0xaf   : > { %1158 = vmatpush.msra.mxu2 %v887_v40  ;;  %1178 = vmatpush.msra.mxu3 %v903_v41  ;;  %v968_v40 = vld [vmem:[%s3348_s3 + $0x3b8] sm:$0xff]  ;;  %v918_v41 = vld [vmem:[%s3348_s3 + $0x228] sm:$0xff] }
  0xb0   : > { %1119 = vmatpush.msra.mxu0 %v854_v42  ;;  %1139 = vmatpush.msra.mxu1 %v870_v43  ;;  %v934_v42 = vld [vmem:[%s3348_s3 + $0x2a8] sm:$0xff]  ;;  %v951_v43 = vld [vmem:[%s3348_s3 + $0x330] sm:$0xff] }
  0xb1   : > { %1159 = vmatpush.msra.mxu2 %v886_v44  ;;  %1179 = vmatpush.msra.mxu3 %v902_v45  ;;  %v481_v44 = vperm.slane %v2819_v38, 0  ;;  %v967_v45 = vld [vmem:[%s3348_s3 + $0x3b0] sm:$0xff] }
  0xb2   : > { %1120 = vmatpush.msra.mxu0 %v853_v46  ;;  %1140 = vmatpush.msra.mxu1 %v869_v47  ;;  %v917_v46 = vld [vmem:[%s3348_s3 + $0x220] sm:$0xff] }
  0xb3   : > { %1160 = vmatpush.msra.mxu2 %v885_v48  ;;  %1180 = vmatpush.msra.mxu3 %v901_v49  ;;  %v933_v47 = vld [vmem:[%s3348_s3 + $0x2a0] sm:$0xff]  ;;  %v950_v48 = vld [vmem:[%s3348_s3 + $0x328] sm:$0xff] }
  0xb4   : > { %1121 = vmatpush.msra.mxu0 %v852_v50  ;;  %1141 = vmatpush.msra.mxu1 %v868_v51  ;;  %v966_v49 = vld [vmem:[%s3348_s3 + $0x3a8] sm:$0xff]  ;;  %v916_v50 = vld [vmem:[%s3348_s3 + $0x218] sm:$0xff] }
  0xb5   : > { %1161 = vmatpush.msra.mxu2 %v884_v52  ;;  %1181 = vmatpush.msra.mxu3 %v900_v53  ;;  %v932_v52 = vld [vmem:[%s3348_s3 + $0x298] sm:$0xff]  ;;  %v482_v53 = vperm.slane %v2819_v38, 1 }
  0xb6   : > { %1122 = vmatpush.msra.mxu0 %v851_v54  ;;  %1142 = vmatpush.msra.mxu1 %v867_v55  ;;  %v949_v55 = vld [vmem:[%s3348_s3 + $0x320] sm:$0xff] }
  0xb7   : > { %1162 = vmatpush.msra.mxu2 %v883_v56  ;;  %1182 = vmatpush.msra.mxu3 %v899_v57  ;;  %v965_v56 = vld [vmem:[%s3348_s3 + $0x3a0] sm:$0xff]  ;;  %v915_v57 = vld [vmem:[%s3348_s3 + $0x210] sm:$0xff] }
  0xb8   : > { %1123 = vmatpush.msra.mxu0 %v850_v58  ;;  %1143 = vmatpush.msra.mxu1 %v866_v59  ;;  %v931_v58 = vld [vmem:[%s3348_s3 + $0x290] sm:$0xff] }
  0xb9   : > { %1163 = vmatpush.msra.mxu2 %v882_v60  ;;  %1183 = vmatpush.msra.mxu3 %v898_v61  ;;  %v948_v61 = vld [vmem:[%s3348_s3 + $0x318] sm:$0xff] }
  0xba   : > { %1124 = vmatpush.msra.mxu0 %v849_v63  ;;  %1144 = vmatpush.msra.mxu1 %v865_v0  ;;  %v483_v63 = vperm.slane %v2819_v38, 2 }
  0xbb   : > { %1164 = vmatpush.msra.mxu2 %v881_v3  ;;  %1184 = vmatpush.msra.mxu3 %v897_v4  ;;  %v947_v3 = vld [vmem:[%s3348_s3 + $0x310] sm:$0xff]  ;;  %v964_v4 = vld [vmem:[%s3348_s3 + $0x398] sm:$0xff] }
  0xbc   : > { %1189 = vmatpush.msrb.mxu0 %v928_v1  ;;  %1209 = vmatpush.msrb.mxu1 %v944_v2  ;;  %v914_v1 = vld [vmem:[%s3348_s3 + $0x208] sm:$0xff] }
  0xbd   : > { %1229 = vmatpush.msrb.mxu2 %v960_v7  ;;  %1249 = vmatpush.msrb.mxu3 %v976_v8  ;;  %v930_v2 = vld [vmem:[%s3348_s3 + $0x288] sm:$0xff]  ;;  %v929_v8 = vld [vmem:[%s3348_s3 + $0x280] sm:$0xff] }
  0xbe   : > { %1190 = vmatpush.msrb.mxu0 %v927_v5  ;;  %1210 = vmatpush.msrb.mxu1 %v943_v6  ;;  %v913_v6 = vld [vmem:[%s3348_s3 + $0x200] sm:$0xff] }
  0xbf   : > { %1230 = vmatpush.msrb.mxu2 %v959_v62  ;;  %1250 = vmatpush.msrb.mxu3 %v975_v11  ;;  %v1008_v11 = vld [vmem:[%s3348_s3 + $0x4f8] sm:$0xff] }
  0xc0   : > { %1191 = vmatpush.msrb.mxu0 %v926_v9  ;;  %1211 = vmatpush.msrb.mxu1 %v942_v10  ;;  %v484_v9 = vperm.slane %v2819_v38, 3  ;;  %v992_v10 = vld [vmem:[%s3348_s3 + $0x478] sm:$0xff] }
  0xc1   : > { %1231 = vmatpush.msrb.mxu2 %v958_v14  ;;  %1251 = vmatpush.msrb.mxu3 %v974_v15  ;;  %v963_v15 = vld [vmem:[%s3348_s3 + $0x390] sm:$0xff] }
  0xc2   : > { %1192 = vmatpush.msrb.mxu0 %v925_v12  ;;  %1212 = vmatpush.msrb.mxu1 %v941_v13  ;;  %v946_v12 = vld [vmem:[%s3348_s3 + $0x308] sm:$0xff]  ;;  %v991_v13 = vld [vmem:[%s3348_s3 + $0x470] sm:$0xff] }
  0xc3   : > { %1232 = vmatpush.msrb.mxu2 %v957_v18  ;;  %1252 = vmatpush.msrb.mxu3 %v973_v19  ;;  %v945_v18 = vld [vmem:[%s3348_s3 + $0x300] sm:$0xff] }
  0xc4   : > { %1193 = vmatpush.msrb.mxu0 %v924_v16  ;;  %1213 = vmatpush.msrb.mxu1 %v940_v17  ;;  %v1007_v17 = vld [vmem:[%s3348_s3 + $0x4f0] sm:$0xff] }
  0xc5   : > { %1233 = vmatpush.msrb.mxu2 %v956_v22  ;;  %1253 = vmatpush.msrb.mxu3 %v972_v23  ;;  %v1006_v22 = vld [vmem:[%s3348_s3 + $0x4e8] sm:$0xff]  ;;  %v989_v23 = vld [vmem:[%s3348_s3 + $0x460] sm:$0xff] }
  0xc6   : > { %1194 = vmatpush.msrb.mxu0 %v923_v20  ;;  %1214 = vmatpush.msrb.mxu1 %v939_v21  ;;  %v990_v20 = vld [vmem:[%s3348_s3 + $0x468] sm:$0xff] }
  0xc7   : > { %1234 = vmatpush.msrb.mxu2 %v955_v26  ;;  %1254 = vmatpush.msrb.mxu3 %v971_v27  ;;  %v962_v21 = vld [vmem:[%s3348_s3 + $0x388] sm:$0xff]  ;;  %v961_v27 = vld [vmem:[%s3348_s3 + $0x380] sm:$0xff] }
  0xc8   : > { %1195 = vmatpush.msrb.mxu0 %v922_v24  ;;  %1215 = vmatpush.msrb.mxu1 %v938_v25  ;;  %v1024_v24 = vld [vmem:[%s3348_s3 + $0x578] sm:$0xff]  ;;  %v487_v25 = vperm.slane %v2819_v38, 6 }
  0xc9   : > { %1235 = vmatpush.msrb.mxu2 %v954_v30  ;;  %1255 = vmatpush.msrb.mxu3 %v970_v31  ;;  %v1023_v30 = vld [vmem:[%s3348_s3 + $0x570] sm:$0xff]  ;;  %v1040_v31 = vld [vmem:[%s3348_s3 + $0x5f8] sm:$0xff] }
  0xca   : > { %1196 = vmatpush.msrb.mxu0 %v921_v28  ;;  %1216 = vmatpush.msrb.mxu1 %v937_v29  ;;  %v1005_v28 = vld [vmem:[%s3348_s3 + $0x4e0] sm:$0xff]  ;;  %v988_v29 = vld [vmem:[%s3348_s3 + $0x458] sm:$0xff] }
  0xcb   : > { %1236 = vmatpush.msrb.mxu2 %v953_v34  ;;  %1256 = vmatpush.msrb.mxu3 %v969_v35  ;;  %v488_v34 = vperm.slane %v2819_v38, 7 }
  0xcc   : > { %1197 = vmatpush.msrb.mxu0 %v920_v32  ;;  %1217 = vmatpush.msrb.mxu1 %v936_v33  ;;  %v485_v33 = vperm.slane %v2819_v38, 4 }
  0xcd   : > { %1237 = vmatpush.msrb.mxu2 %v952_v39  ;;  %1257 = vmatpush.msrb.mxu3 %v968_v40  ;;  %v1022_v39 = vld [vmem:[%s3348_s3 + $0x568] sm:$0xff]  ;;  %v1039_v40 = vld [vmem:[%s3348_s3 + $0x5f0] sm:$0xff] }
  0xce   : > { %1198 = vmatpush.msrb.mxu0 %v919_v36  ;;  %1218 = vmatpush.msrb.mxu1 %v935_v37  ;;  %v987_v36 = vld [vmem:[%s3348_s3 + $0x450] sm:$0xff]  ;;  %v1004_v37 = vld [vmem:[%s3348_s3 + $0x4d8] sm:$0xff] }
  0xcf   : > { %1238 = vmatpush.msrb.mxu2 %v951_v43  ;;  %1258 = vmatpush.msrb.mxu3 %v967_v45  ;;  %v1003_v45 = vld [vmem:[%s3348_s3 + $0x4d0] sm:$0xff] }
  0xd0   : > { %1199 = vmatpush.msrb.mxu0 %v918_v41  ;;  %1219 = vmatpush.msrb.mxu1 %v934_v42  ;;  %v530_v51 = vpop.f32.mrf.mxu0  ;;  %v486_v41 = vperm.slane %v2819_v38, 5  ;;  %v1021_v38 = vld [vmem:[%s3348_s3 + $0x560] sm:$0xff] }
  0xd1   : > { %v531_v54 = vadd.f32 %v530_v51, %v481_v44  ;;  %1239 = vmatpush.msrb.mxu2 %v950_v48  ;;  %1259 = vmatpush.msrb.mxu3 %v966_v49  ;;  %v986_v44 = vld [vmem:[%s3348_s3 + $0x448] sm:$0xff]  ;;  %v985_v51 = vld [vmem:[%s3348_s3 + $0x440] sm:$0xff] }
  0xd2   : > { %1200 = vmatpush.msrb.mxu0 %v917_v46  ;;  %1220 = vmatpush.msrb.mxu1 %v933_v47  ;;  %v1038_v49 = vld [vmem:[%s3348_s3 + $0x5e8] sm:$0xff] }
  0xd3   : > { %v833_v59 = vmax.f32 %v531_v54, 0.0  ;;  %v550_v60 = vpop.f32.mrf.mxu1  ;;  %1240 = vmatpush.msrb.mxu2 %v949_v55  ;;  %1260 = vmatpush.msrb.mxu3 %v965_v56  ;;  %v1002_v54 = vld [vmem:[%s3348_s3 + $0x4c8] sm:$0xff]  ;;  %v1020_v55 = vld [vmem:[%s3348_s3 + $0x558] sm:$0xff] }
  0xd4   : > { %1201 = vmatpush.msrb.mxu0 %v916_v50  ;;  %1221 = vmatpush.msrb.mxu1 %v932_v52  ;;  %v551_v0 = vadd.f32 %v550_v60, %v482_v53  ;;  %v1001_v60 = vld [vmem:[%s3348_s3 + $0x4c0] sm:$0xff] }
  0xd5   : > { %1241 = vmatpush.msrb.mxu2 %v948_v61  ;;  %1125 = vmatmul.f32.vlgmr.msra.gmra.mxu0 %v833_v59  ;;  %v1019_v61 = vld [vmem:[%s3348_s3 + $0x550] sm:$0xff] }
  0xd6   : > { %1202 = vmatpush.msrb.mxu0 %v915_v57  ;;  %1222 = vmatpush.msrb.mxu1 %v931_v58  ;;  %v834_v5 = vmax.f32 %v551_v0, 0.0  ;;  %v570_v7 = vpop.f32.mrf.mxu2  ;;  %v1037_v57 = vld [vmem:[%s3348_s3 + $0x5e0] sm:$0xff]  ;;  %v984_v58 = vld [vmem:[%s3348_s3 + $0x438] sm:$0xff]  ;;  %v983_v0 = vld [vmem:[%s3348_s3 + $0x430] sm:$0xff] }
  0xd7   : > { %v571_v62 = vadd.f32 %v570_v7, %v483_v63  ;;  %1242 = vmatpush.msrb.mxu2 %v947_v3  ;;  %1261 = vmatpush.msrb.mxu3 %v964_v4  ;;  %v1036_v63 = vld [vmem:[%s3348_s3 + $0x5d8] sm:$0xff]  ;;  %v1035_v3 = vld [vmem:[%s3348_s3 + $0x5d0] sm:$0xff]  ;;  %v982_v4 = vld [vmem:[%s3348_s3 + $0x428] sm:$0xff] }
  0xd8   : > { %1203 = vmatpush.msrb.mxu0 %v914_v1  ;;  %1223 = vmatpush.msrb.mxu1 %v930_v2  ;;  %v1000_v1 = vld [vmem:[%s3348_s3 + $0x4b8] sm:$0xff]  ;;  %v1018_v2 = vld [vmem:[%s3348_s3 + $0x548] sm:$0xff] }
  0xd9   : > { %v590_v14 = vpop.f32.mrf.mxu3  ;;  %1145 = vmatmul.f32.vlgmr.msra.gmra.mxu1 %v834_v5  ;;  %v835_v19 = vmax.f32 %v571_v62, 0.0  ;;  %1243 = vmatpush.msrb.mxu2 %v946_v12  ;;  %v999_v5 = vld [vmem:[%s3348_s3 + $0x4b0] sm:$0xff]  ;;  %v1034_v7 = vld [vmem:[%s3348_s3 + $0x5c8] sm:$0xff]  ;;  %v1016_v62 = vld [vmem:[%s3348_s3 + $0x538] sm:$0xff] }
  0xda   : > { %1204 = vmatpush.msrb.mxu0 %v913_v6  ;;  %1224 = vmatpush.msrb.mxu1 %v929_v8  ;;  %v591_v16 = vadd.f32 %v590_v14, %v484_v9  ;;  %v1017_v6 = vld [vmem:[%s3348_s3 + $0x540] sm:$0xff]  ;;  %v3024_v8 = vld [vmem:[%s3347_s2 + $0x8] sm:$0xff]  ;;  %v980_v12 = vld [vmem:[%s3348_s3 + $0x418] sm:$0xff] }
  0xdb   : > { %1262 = vmatpush.msrb.mxu3 %v963_v15  ;;  %1244 = vmatpush.msrb.mxu2 %v945_v18  ;;  %v981_v9 = vld [vmem:[%s3348_s3 + $0x420] sm:$0xff]  ;;  %v489_v14 = vperm.slane %v3024_v8, 0  ;;  %v1015_v15 = vld [vmem:[%s3348_s3 + $0x530] sm:$0xff]  ;;  %v996_v18 = vld [vmem:[%s3348_s3 + $0x498] sm:$0xff] }
  0xdc   : > { %1269 = vmatpush.msra.mxu0 %v992_v10  ;;  %1289 = vmatpush.msra.mxu1 %v1008_v11  ;;  %v836_v26 = vmax.f32 %v591_v16, 0.0  ;;  %v998_v10 = vld [vmem:[%s3348_s3 + $0x4a8] sm:$0xff]  ;;  %v1033_v11 = vld [vmem:[%s3348_s3 + $0x5c0] sm:$0xff]  ;;  %v1032_v16 = vld [vmem:[%s3348_s3 + $0x5b8] sm:$0xff] }
  0xdd   : > { %1263 = vmatpush.msrb.mxu3 %v962_v21  ;;  %1165 = vmatmul.f32.vlgmr.msra.gmra.mxu2 %v835_v19  ;;  %v1031_v21 = vld [vmem:[%s3348_s3 + $0x5b0] sm:$0xff] }
  0xde   : > { %1270 = vmatpush.msra.mxu0 %v991_v13  ;;  %1290 = vmatpush.msra.mxu1 %v1007_v17  ;;  %v997_v13 = vld [vmem:[%s3348_s3 + $0x4a0] sm:$0xff]  ;;  %v979_v17 = vld [vmem:[%s3348_s3 + $0x410] sm:$0xff] }
  0xdf   : > { %1309 = vmatpush.msra.mxu2 %v1024_v24  ;;  %1264 = vmatpush.msrb.mxu3 %v961_v27  ;;  %v978_v24 = vld [vmem:[%s3348_s3 + $0x408] sm:$0xff] }
  0xe0   : > { %1271 = vmatpush.msra.mxu0 %v990_v20  ;;  %1291 = vmatpush.msra.mxu1 %v1006_v22  ;;  %v650_v32 = vpop.f32.mrf.mxu2  ;;  %v1014_v20 = vld [vmem:[%s3348_s3 + $0x528] sm:$0xff]  ;;  %v490_v22 = vperm.slane %v3024_v8, 1 }
  0xe1   : > { %v651_v35 = vadd.f32 %v650_v32, %v487_v25  ;;  %1185 = vmatmul.f32.vlgmr.msra.gmra.mxu3 %v836_v26  ;;  %1310 = vmatpush.msra.mxu2 %v1023_v30  ;;  %v995_v25 = vld [vmem:[%s3348_s3 + $0x490] sm:$0xff]  ;;  %v1013_v26 = vld [vmem:[%s3348_s3 + $0x520] sm:$0xff]  ;;  %v1030_v27 = vld [vmem:[%s3348_s3 + $0x5a8] sm:$0xff] }
  0xe2   : > { %1272 = vmatpush.msra.mxu0 %v989_v23  ;;  %1292 = vmatpush.msra.mxu1 %v1005_v28  ;;  %v994_v30 = vld [vmem:[%s3348_s3 + $0x488] sm:$0xff] }
  0xe3   : > { %1329 = vmatpush.msra.mxu3 %v1040_v31  ;;  %v610_v42 = vpop.f32.mrf.mxu0  ;;  %v670_v43 = vpop.f32.mrf.mxu3  ;;  %v839_v46 = vmax.f32 %v651_v35, 0.0  ;;  %1311 = vmatpush.msra.mxu2 %v1022_v39  ;;  %v491_v31 = vperm.slane %v3024_v8, 2  ;;  %v1029_v35 = vld [vmem:[%s3348_s3 + $0x5a0] sm:$0xff]  ;;  %v1056_v39 = vld [vmem:[%s3348_s3 + $0x678] sm:$0xff] }
  0xe4   : > { %1273 = vmatpush.msra.mxu0 %v988_v29  ;;  %1293 = vmatpush.msra.mxu1 %v1004_v37  ;;  %v611_v47 = vadd.f32 %v610_v42, %v485_v33  ;;  %v671_v48 = vadd.f32 %v670_v43, %v488_v34  ;;  %v977_v29 = vld [vmem:[%s3348_s3 + $0x400] sm:$0xff]  ;;  %v1012_v34 = vld [vmem:[%s3348_s3 + $0x518] sm:$0xff]  ;;  %v492_v42 = vperm.slane %v3024_v8, 3 }
  0xe5   : > { %1330 = vmatpush.msra.mxu3 %v1039_v40  ;;  %v630_v50 = vpop.f32.mrf.mxu1  ;;  %1312 = vmatpush.msra.mxu2 %v1021_v38  ;;  %v1027_v38 = vld [vmem:[%s3348_s3 + $0x590] sm:$0xff] }
  0xe6   : > { %1274 = vmatpush.msra.mxu0 %v987_v36  ;;  %v837_v52 = vmax.f32 %v611_v47, 0.0  ;;  %1294 = vmatpush.msra.mxu1 %v1003_v45  ;;  %v631_v53 = vadd.f32 %v630_v50, %v486_v41  ;;  %v840_v56 = vmax.f32 %v671_v48, 0.0  ;;  %v993_v36 = vld [vmem:[%s3348_s3 + $0x480] sm:$0xff]  ;;  %v1011_v41 = vld [vmem:[%s3348_s3 + $0x510] sm:$0xff]  ;;  %v1010_v48 = vld [vmem:[%s3348_s3 + $0x508] sm:$0xff] }
  0xe7   : > { %1331 = vmatpush.msra.mxu3 %v1038_v49  ;;  %1245 = vmatmul.f32.vlgmr.msrb.gmra.mxu2 %v839_v46  ;;  %v1055_v45 = vld [vmem:[%s3348_s3 + $0x670] sm:$0xff]  ;;  %v1072_v46 = vld [vmem:[%s3348_s3 + $0x6f8] sm:$0xff]  ;;  %v1054_v50 = vld [vmem:[%s3348_s3 + $0x668] sm:$0xff] }
  0xe8   : > { %1275 = vmatpush.msra.mxu0 %v986_v44  ;;  %v838_v59 = vmax.f32 %v631_v53, 0.0  ;;  %1295 = vmatpush.msra.mxu1 %v1002_v54  ;;  %v1028_v44 = vld [vmem:[%s3348_s3 + $0x598] sm:$0xff]  ;;  %v1009_v53 = vld [vmem:[%s3348_s3 + $0x500] sm:$0xff]  ;;  %v1026_v54 = vld [vmem:[%s3348_s3 + $0x588] sm:$0xff] }
  0xe9   : > { %1313 = vmatpush.msra.mxu2 %v1020_v55  ;;  %1332 = vmatpush.msra.mxu3 %v1037_v57  ;;  %v1053_v55 = vld [vmem:[%s3348_s3 + $0x660] sm:$0xff]  ;;  %v1088_v57 = vld [vmem:[%s3348_s3 + $0x778] sm:$0xff] }
  0xea   : > { %1276 = vmatpush.msra.mxu0 %v985_v51  ;;  %1265 = vmatmul.f32.vlgmr.msrb.gmra.mxu3 %v840_v56  ;;  %v1071_v51 = vld [vmem:[%s3348_s3 + $0x6f0] sm:$0xff]  ;;  %v1070_v56 = vld [vmem:[%s3348_s3 + $0x6e8] sm:$0xff] }
  0xeb   : > { %1205 = vmatmul.f32.vlgmr.msrb.gmra.mxu0 %v837_v52  ;;  %1296 = vmatpush.msra.mxu1 %v1001_v60  ;;  %v1052_v60 = vld [vmem:[%s3348_s3 + $0x658] sm:$0xff] }
  0xec   : > { %1277 = vmatpush.msra.mxu0 %v984_v58  ;;  %1314 = vmatpush.msra.mxu2 %v1019_v61  ;;  %v1069_v61 = vld [vmem:[%s3348_s3 + $0x6e0] sm:$0xff] }
  0xed   : > { %1333 = vmatpush.msra.mxu3 %v1036_v63  ;;  %1225 = vmatmul.f32.vlgmr.msrb.gmra.mxu1 %v838_v59  ;;  %v1025_v59 = vld [vmem:[%s3348_s3 + $0x580] sm:$0xff]  ;;  %v1087_v63 = vld [vmem:[%s3348_s3 + $0x770] sm:$0xff] }
  0xee   : > { %1278 = vmatpush.msra.mxu0 %v983_v0  ;;  %1297 = vmatpush.msra.mxu1 %v1000_v1  ;;  %v1104_v0 = vld [vmem:[%s3348_s3 + $0x7f8] sm:$0xff]  ;;  %v1051_v1 = vld [vmem:[%s3348_s3 + $0x650] sm:$0xff] }
  0xef   : > { %1315 = vmatpush.msra.mxu2 %v1018_v2  ;;  %1334 = vmatpush.msra.mxu3 %v1035_v3  ;;  %v1068_v2 = vld [vmem:[%s3348_s3 + $0x6d8] sm:$0xff]  ;;  %v1086_v3 = vld [vmem:[%s3348_s3 + $0x768] sm:$0xff] }
  0xf0   : > { %1279 = vmatpush.msra.mxu0 %v982_v4  ;;  %1298 = vmatpush.msra.mxu1 %v999_v5  ;;  %v1103_v4 = vld [vmem:[%s3348_s3 + $0x7f0] sm:$0xff]  ;;  %v1050_v5 = vld [vmem:[%s3348_s3 + $0x648] sm:$0xff] }
  0xf1   : > { %1316 = vmatpush.msra.mxu2 %v1017_v6  ;;  %1335 = vmatpush.msra.mxu3 %v1034_v7  ;;  %v1067_v6 = vld [vmem:[%s3348_s3 + $0x6d0] sm:$0xff]  ;;  %v1085_v7 = vld [vmem:[%s3348_s3 + $0x760] sm:$0xff] }
  0xf2   : > { %1280 = vmatpush.msra.mxu0 %v981_v9  ;;  %1299 = vmatpush.msra.mxu1 %v998_v10  ;;  %v1102_v9 = vld [vmem:[%s3348_s3 + $0x7e8] sm:$0xff]  ;;  %v1049_v10 = vld [vmem:[%s3348_s3 + $0x640] sm:$0xff] }
  0xf3   : > { %1317 = vmatpush.msra.mxu2 %v1016_v62  ;;  %1336 = vmatpush.msra.mxu3 %v1033_v11  ;;  %v1066_v62 = vld [vmem:[%s3348_s3 + $0x6c8] sm:$0xff]  ;;  %v1084_v11 = vld [vmem:[%s3348_s3 + $0x758] sm:$0xff] }
  0xf4   : > { %1281 = vmatpush.msra.mxu0 %v980_v12  ;;  %1300 = vmatpush.msra.mxu1 %v997_v13  ;;  %v690_v19 = vpop.f32.mrf.mxu0  ;;  %v1101_v12 = vld [vmem:[%s3348_s3 + $0x7e0] sm:$0xff]  ;;  %v1048_v13 = vld [vmem:[%s3348_s3 + $0x638] sm:$0xff] }
  0xf5   : > { %1318 = vmatpush.msra.mxu2 %v1015_v15  ;;  %1337 = vmatpush.msra.mxu3 %v1032_v16  ;;  %v691_v23 = vadd.f32 %v690_v19, %v489_v14  ;;  %v1065_v14 = vld [vmem:[%s3348_s3 + $0x6c0] sm:$0xff]  ;;  %v1083_v15 = vld [vmem:[%s3348_s3 + $0x750] sm:$0xff]  ;;  %v1100_v16 = vld [vmem:[%s3348_s3 + $0x7d8] sm:$0xff] }
  0xf6   : > { %1282 = vmatpush.msra.mxu0 %v979_v17  ;;  %1301 = vmatpush.msra.mxu1 %v996_v18  ;;  %v1047_v17 = vld [vmem:[%s3348_s3 + $0x630] sm:$0xff]  ;;  %v1064_v18 = vld [vmem:[%s3348_s3 + $0x6b8] sm:$0xff]  ;;  %v1082_v19 = vld [vmem:[%s3348_s3 + $0x748] sm:$0xff] }
  0xf7   : > { %1319 = vmatpush.msra.mxu2 %v1014_v20  ;;  %1338 = vmatpush.msra.mxu3 %v1031_v21  ;;  %v710_v28 = vpop.f32.mrf.mxu1  ;;  %v841_v32 = vmax.f32 %v691_v23, 0.0  ;;  %v1099_v20 = vld [vmem:[%s3348_s3 + $0x7d0] sm:$0xff]  ;;  %v1046_v21 = vld [vmem:[%s3348_s3 + $0x628] sm:$0xff]  ;;  %v1081_v23 = vld [vmem:[%s3348_s3 + $0x740] sm:$0xff] }
  0xf8   : > { %v711_v33 = vadd.f32 %v710_v28, %v490_v22  ;;  %1283 = vmatpush.msra.mxu0 %v978_v24  ;;  %1302 = vmatpush.msra.mxu1 %v995_v25  ;;  %v1063_v22 = vld [vmem:[%s3348_s3 + $0x6b0] sm:$0xff]  ;;  %v1098_v24 = vld [vmem:[%s3348_s3 + $0x7c8] sm:$0xff]  ;;  %v1045_v25 = vld [vmem:[%s3348_s3 + $0x620] sm:$0xff] }
  0xf9   : > { %1320 = vmatpush.msra.mxu2 %v1013_v26  ;;  %1339 = vmatpush.msra.mxu3 %v1030_v27  ;;  %v1062_v26 = vld [vmem:[%s3348_s3 + $0x6a8] sm:$0xff]  ;;  %v1080_v27 = vld [vmem:[%s3348_s3 + $0x738] sm:$0xff]  ;;  %v1097_v28 = vld [vmem:[%s3348_s3 + $0x7c0] sm:$0xff] }
  0xfa   : > { %v842_v37 = vmax.f32 %v711_v33, 0.0  ;;  %1284 = vmatpush.msra.mxu0 %v977_v29  ;;  %1303 = vmatpush.msra.mxu1 %v994_v30  ;;  %v730_v40 = vpop.f32.mrf.mxu2  ;;  %v1044_v29 = vld [vmem:[%s3348_s3 + $0x618] sm:$0xff]  ;;  %v1061_v30 = vld [vmem:[%s3348_s3 + $0x6a0] sm:$0xff] }
  0xfb   : > { %1321 = vmatpush.msra.mxu2 %v1012_v34  ;;  %1340 = vmatpush.msra.mxu3 %v1029_v35  ;;  %v731_v43 = vadd.f32 %v730_v40, %v491_v31  ;;  %v493_v31 = vperm.slane %v3024_v8, 4  ;;  %v1096_v33 = vld [vmem:[%s3348_s3 + $0x7b8] sm:$0xff]  ;;  %v1043_v34 = vld [vmem:[%s3348_s3 + $0x610] sm:$0xff] }
  0xfc   : > { %1285 = vmatmul.f32.vlgmr.msra.gmra.mxu0 %v841_v32  ;;  %1304 = vmatpush.msra.mxu1 %v993_v36  ;;  %v1079_v32 = vld [vmem:[%s3348_s3 + $0x730] sm:$0xff]  ;;  %v1060_v35 = vld [vmem:[%s3348_s3 + $0x698] sm:$0xff]  ;;  %v494_v36 = vperm.slane %v3024_v8, 5 }
  0xfd   : > { %1349 = vmatpush.msrb.mxu0 %v1056_v39  ;;  %1322 = vmatpush.msra.mxu2 %v1011_v41  ;;  %v750_v47 = vpop.f32.mrf.mxu3  ;;  %v843_v52 = vmax.f32 %v731_v43, 0.0  ;;  %v1078_v39 = vld [vmem:[%s3348_s3 + $0x728] sm:$0xff]  ;;  %v1095_v40 = vld [vmem:[%s3348_s3 + $0x7b0] sm:$0xff] }
  0xfe   : > { %1341 = vmatpush.msra.mxu3 %v1028_v44  ;;  %1305 = vmatmul.f32.vlgmr.msra.gmra.mxu1 %v842_v37  ;;  %v751_v49 = vadd.f32 %v750_v47, %v492_v42  ;;  %v1042_v42 = vld [vmem:[%s3348_s3 + $0x608] sm:$0xff]  ;;  %v1059_v43 = vld [vmem:[%s3348_s3 + $0x690] sm:$0xff] }
  0xff   : > { %1350 = vmatpush.msrb.mxu0 %v1055_v45  ;;  %1369 = vmatpush.msrb.mxu1 %v1072_v46  ;;  %v1077_v45 = vld [vmem:[%s3348_s3 + $0x720] sm:$0xff]  ;;  %v1094_v46 = vld [vmem:[%s3348_s3 + $0x7a8] sm:$0xff] }
 0x100   : > { %1323 = vmatpush.msra.mxu2 %v1010_v48  ;;  %1342 = vmatpush.msra.mxu3 %v1027_v38  ;;  %v844_v58 = vmax.f32 %v751_v49, 0.0  ;;  %v1041_v48 = vld [vmem:[%s3348_s3 + $0x600] sm:$0xff]  ;;  %v1058_v38 = vld [vmem:[%s3348_s3 + $0x688] sm:$0xff]  ;;  %v495_v49 = vperm.slane %v3024_v8, 6 }
 0x101   : > { %1351 = vmatpush.msrb.mxu0 %v1054_v50  ;;  %1370 = vmatpush.msrb.mxu1 %v1071_v51  ;;  %v1076_v51 = vld [vmem:[%s3348_s3 + $0x718] sm:$0xff] }
 0x102   : > { %1324 = vmatpush.msra.mxu2 %v1009_v53  ;;  %1343 = vmatpush.msra.mxu3 %v1026_v54  ;;  %v1057_v53 = vld [vmem:[%s3348_s3 + $0x680] sm:$0xff]  ;;  %v496_v54 = vperm.slane %v3024_v8, 7  ;;  %v1074_v8 = vld [vmem:[%s3348_s3 + $0x708] sm:$0xff] }
 0x103   : > { %1325 = vmatmul.f32.vlgmr.msra.gmra.mxu2 %v843_v52  ;;  %1352 = vmatpush.msrb.mxu0 %v1053_v55  ;;  %v1093_v52 = vld [vmem:[%s3348_s3 + $0x7a0] sm:$0xff] }
 0x104   : > { %1371 = vmatpush.msrb.mxu1 %v1070_v56  ;;  %1389 = vmatpush.msrb.mxu2 %v1088_v57  ;;  %v1075_v57 = vld [vmem:[%s3348_s3 + $0x710] sm:$0xff] }
 0x105   : > { %1344 = vmatpush.msra.mxu3 %v1025_v59  ;;  %1353 = vmatpush.msrb.mxu0 %v1052_v60 }
 0x106   : > { %1345 = vmatmul.f32.vlgmr.msra.gmra.mxu3 %v844_v58  ;;  %1372 = vmatpush.msrb.mxu1 %v1069_v61  ;;  %v1092_v58 = vld [vmem:[%s3348_s3 + $0x798] sm:$0xff]  ;;  %v1091_v61 = vld [vmem:[%s3348_s3 + $0x790] sm:$0xff] }
 0x107   : > { %1390 = vmatpush.msrb.mxu2 %v1087_v63  ;;  %1409 = vmatpush.msrb.mxu3 %v1104_v0 }
 0x108   : > { %1354 = vmatpush.msrb.mxu0 %v1051_v1  ;;  %1373 = vmatpush.msrb.mxu1 %v1068_v2  ;;  %v1073_v1 = vld [vmem:[%s3348_s3 + $0x700] sm:$0xff]  ;;  %v1090_v2 = vld [vmem:[%s3348_s3 + $0x788] sm:$0xff] }
 0x109   : > { %1391 = vmatpush.msrb.mxu2 %v1086_v3  ;;  %1410 = vmatpush.msrb.mxu3 %v1103_v4  ;;  %v1089_v4 = vld [vmem:[%s3348_s3 + $0x780] sm:$0xff] }
 0x10a   : > { %1355 = vmatpush.msrb.mxu0 %v1050_v5  ;;  %1374 = vmatpush.msrb.mxu1 %v1067_v6  ;;  %v1573_v5 = vld [vmem:[%s3349_s4] ss:$0 sm:$0xff] }
 0x10b   : > { %1392 = vmatpush.msrb.mxu2 %v1085_v7  ;;  %1411 = vmatpush.msrb.mxu3 %v1102_v9 }
 0x10c   : > { %1356 = vmatpush.msrb.mxu0 %v1049_v10  ;;  %1375 = vmatpush.msrb.mxu1 %v1066_v62 }
 0x10d   : > { %1393 = vmatpush.msrb.mxu2 %v1084_v11  ;;  %1412 = vmatpush.msrb.mxu3 %v1101_v12 }
 0x10e   : > { %1357 = vmatpush.msrb.mxu0 %v1048_v13  ;;  %1376 = vmatpush.msrb.mxu1 %v1065_v14 }
 0x10f   : > { %1394 = vmatpush.msrb.mxu2 %v1083_v15  ;;  %1413 = vmatpush.msrb.mxu3 %v1100_v16 }
 0x110   : > { %1358 = vmatpush.msrb.mxu0 %v1047_v17  ;;  %1377 = vmatpush.msrb.mxu1 %v1064_v18 }
 0x111   : > { %1395 = vmatpush.msrb.mxu2 %v1082_v19  ;;  %1414 = vmatpush.msrb.mxu3 %v1099_v20 }
 0x112   : > { %1359 = vmatpush.msrb.mxu0 %v1046_v21  ;;  %1378 = vmatpush.msrb.mxu1 %v1063_v22 }
 0x113   : > { %1396 = vmatpush.msrb.mxu2 %v1081_v23  ;;  %1415 = vmatpush.msrb.mxu3 %v1098_v24 }
 0x114   : > { %1360 = vmatpush.msrb.mxu0 %v1045_v25  ;;  %1379 = vmatpush.msrb.mxu1 %v1062_v26 }
 0x115   : > { %1397 = vmatpush.msrb.mxu2 %v1080_v27  ;;  %1416 = vmatpush.msrb.mxu3 %v1097_v28 }
 0x116   : > { %1361 = vmatpush.msrb.mxu0 %v1044_v29  ;;  %1380 = vmatpush.msrb.mxu1 %v1061_v30  ;;  %v770_v37 = vpop.f32.mrf.mxu0 }
 0x117   : > { %1398 = vmatpush.msrb.mxu2 %v1079_v32  ;;  %1417 = vmatpush.msrb.mxu3 %v1096_v33  ;;  %v771_v41 = vadd.f32 %v770_v37, %v493_v31 }
 0x118   : > { %1362 = vmatpush.msrb.mxu0 %v1043_v34  ;;  %1381 = vmatpush.msrb.mxu1 %v1060_v35  ;;  %v790_v44 = vpop.f32.mrf.mxu1 }
 0x119   : > { %1399 = vmatpush.msrb.mxu2 %v1078_v39  ;;  %1418 = vmatpush.msrb.mxu3 %v1095_v40  ;;  %v791_v47 = vadd.f32 %v790_v44, %v494_v36  ;;  %v845_v50 = vmax.f32 %v771_v41, 0.0 }
 0x11a   : > { %1363 = vmatpush.msrb.mxu0 %v1042_v42  ;;  %1382 = vmatpush.msrb.mxu1 %v1059_v43 }
 0x11b   : > { %1400 = vmatpush.msrb.mxu2 %v1077_v45  ;;  %1419 = vmatpush.msrb.mxu3 %v1094_v46  ;;  %v846_v55 = vmax.f32 %v791_v47, 0.0 }
 0x11c   : > { %1364 = vmatpush.msrb.mxu0 %v1041_v48  ;;  %1383 = vmatpush.msrb.mxu1 %v1058_v38  ;;  %v810_v56 = vpop.f32.mrf.mxu2 }
 0x11d   : > { %1401 = vmatpush.msrb.mxu2 %v1076_v51  ;;  %1420 = vmatpush.msrb.mxu3 %v1093_v52  ;;  %v811_v59 = vadd.f32 %v810_v56, %v495_v49 }
 0x11e   : > { %1365 = vmatmul.f32.vlgmr.msrb.gmra.mxu0 %v845_v50  ;;  %1384 = vmatpush.msrb.mxu1 %v1057_v53  ;;  %v830_v60 = vpop.f32.mrf.mxu3 }
 0x11f   : > { %1402 = vmatpush.msrb.mxu2 %v1075_v57  ;;  %1421 = vmatpush.msrb.mxu3 %v1092_v58  ;;  %v831_v63 = vadd.f32 %v830_v60, %v496_v54  ;;  %v847_v0 = vmax.f32 %v811_v59, 0.0 }
 0x120   : > { %1385 = vmatmul.f32.vlgmr.msrb.gmra.mxu1 %v846_v55 }
 0x121   : > { %1403 = vmatpush.msrb.mxu2 %v1074_v8  ;;  %1422 = vmatpush.msrb.mxu3 %v1091_v61  ;;  %v848_v3 = vmax.f32 %v831_v63, 0.0 }
 0x123   : > { %1404 = vmatpush.msrb.mxu2 %v1073_v1  ;;  %1423 = vmatpush.msrb.mxu3 %v1090_v2 }
 0x124   : > { %1405 = vmatmul.f32.vlgmr.msrb.gmra.mxu2 %v847_v0 }
 0x125   : > { %1424 = vmatpush.msrb.mxu3 %v1089_v4 }
 0x126   : > { %1425 = vmatmul.f32.vlgmr.msrb.gmra.mxu3 %v848_v3 }
 0x152   : > { %v1126_v6 = vpop.f32.mrf.mxu0 }
 0x153   : > { %v1127_v7 = vadd.f32 %v1573_v5, %v1126_v6 }
 0x156   : > { %v1146_v9 = vpop.f32.mrf.mxu1 }
 0x157   : > { %v1147_v10 = vadd.f32 %v1146_v9, %v1127_v7 }
 0x160   : > { %v1166_v62 = vpop.f32.mrf.mxu2 }
 0x161   : > { %v1167_v11 = vadd.f32 %v1166_v62, %v1147_v10 }
 0x164   : > { %v1186_v12 = vpop.f32.mrf.mxu3 }
 0x165   : > { %v1187_v13 = vadd.f32 %v1186_v12, %v1167_v11 }
 0x168   : > { %v1206_v14 = vpop.f32.mrf.mxu0 }
 0x169   : > { %v1207_v15 = vadd.f32 %v1206_v14, %v1187_v13 }
 0x16a   : > { %v1226_v16 = vpop.f32.mrf.mxu1  ;;  %v1246_v18 = vpop.f32.mrf.mxu2 }
 0x16b   : > { %v1227_v17 = vadd.f32 %v1226_v16, %v1207_v15 }
 0x16d   : > { %v1247_v19 = vadd.f32 %v1246_v18, %v1227_v17  ;;  %v1266_v20 = vpop.f32.mrf.mxu3 }
 0x16f   : > { %v1267_v22 = vadd.f32 %v1266_v20, %v1247_v19 }
 0x179   : > { %v1286_v21 = vpop.f32.mrf.mxu0 }
 0x17a   : > { %v1287_v23 = vadd.f32 %v1286_v21, %v1267_v22 }
 0x17b   : > { %v1306_v24 = vpop.f32.mrf.mxu1 }
 0x17c   : > { %v1307_v26 = vadd.f32 %v1306_v24, %v1287_v23 }
 0x186   : > { %v1326_v25 = vpop.f32.mrf.mxu2 }
 0x187   : > { %v1327_v27 = vadd.f32 %v1326_v25, %v1307_v26 }
 0x189   : > { %v1346_v28 = vpop.f32.mrf.mxu3 }
 0x18a   : > { %v1347_v30 = vadd.f32 %v1346_v28, %v1327_v27 }
 0x19b   : > { %v1366_v29 = vpop.f32.mrf.mxu0 }
 0x19c   : > { %v1367_v31 = vadd.f32 %v1366_v29, %v1347_v30 }
 0x19d   : > { %v1386_v32 = vpop.f32.mrf.mxu1 }
 0x19e   : > { %v1387_v33 = vadd.f32 %v1386_v32, %v1367_v31 }
 0x1a7   : > { %v1406_v34 = vpop.f32.mrf.mxu2 }
 0x1a8   : > { %v1407_v35 = vadd.f32 %v1406_v34, %v1387_v33 }
 0x1a9   : > { %v1426_v36 = vpop.f32.mrf.mxu3 }
 0x1aa   : > { %v1427_v37 = vadd.f32 %v1426_v36, %v1407_v35 }
 0x1ac   : > { %v1429_v39 = vsub.f32 0.0, %v1427_v37 }
 0x1ae   : > { %v1430_v40 = vmul.f32 1.442695, %v1429_v39 }
 0x1b0   : > { %1574 = vpow2.f32 %v1430_v40 }
 0x1b6   : > { %v1575_v41 = vpop.eup %1574 }
 0x1b7   : > { %v1432_v42 = vadd.f32 1.0, %v1575_v41 }
 0x1b9   : > { %1576 = vrcp.f32 %v1432_v42  ;;  %v1444_v46 = vand.u32 2147483648, %v1432_v42  ;;  %v1442_v48 = vand.u32 2147483647, %v1432_v42  ;;  %vm1438_vm1 = vweird.f32 %v1432_v42 }
 0x1bb   : > { %v1445_v49 = vor.u32 1.1754944e-38, %v1444_v46  ;;  %vm1443_vm4 = vcmp.eq.f32.partialorder %v1442_v48, 8.507059e+37 }
 0x1bf   : > { %v1577_v43 = vpop.eup %1576 }
 0x1c0   : > { %v1434_v44 = vmul.f32 %v1577_v43, %v1432_v42  ;;  %vm1439_vm0 = vweird.f32 %v1577_v43 }
 0x1c1   : > { %vm1440_vm2 = vmor %vm1438_vm1, %vm1439_vm0 }
 0x1c2   : > { %v1435_v45 = vsub.f32 1.0, %v1434_v44 }
 0x1c4   : > { %v1436_v47 = vmul.f32 %v1577_v43, %v1435_v45 }
 0x1c6   : > { %v1437_v38 = vadd.f32 %v1577_v43, %v1436_v47 }
 0x1c8   : > { %v1441_v50 = vsel %vm1440_vm2, %v1577_v43, %v1437_v38 }
 0x1c9   : > { %v1446_v51 = vsel %vm1443_vm4, %v1445_v49, %v1441_v50 }
 0x1ca   : > { %1448 = vst.msk [vmem:[%s215_s15] sm:$0xff] %vm1447_vm3, %v1446_v51 }
 0x1cb   : > { %1605 = shalt.err (!%p1602_p3)
}
 0x1cc   : > { %1534 = dma.vmem_to_hbm [thread:$0]  (%p1710_p5), %s1463_s13, 128, %s1465_s8, %s1450_s22  }
 0x1cd PF: > { %p1540_p4 = scmp.ge.s32.totalorder %s1640_s21, 2  ;;  %s1476_s23 = sand.u32 1, %s1628_s18  }
 0x1ce   : > { %s1477_s25 = scalar_lea.sflag [#allocation3], %s1476_s23 }
 0x1cf   : > { %p1537_p7 = pnand %p1540_p4, %p1714_p6 }
 0x1d1   : > { %p1538_p8 = pneg %p1537_p7 }
 0x1d3   : > { %1623 = dma.done.wait (%p1538_p8), %s1477_s25, 128  }
 0x1d4   : > { %1625 = vsyncadd (%p1538_p8), %s1477_s25, 4294967168  ;;  %p15_p9 = scmp.ge.s32.totalorder %s1697_s24, 4   ;;  %s3353_s18 = smov %s1632_s19 }
 0x1d5   : > { %s3354_s19 = smov %s1636_s20  ;;  %s3355_s20 = smov %s1708_s27 }
 0x1d6   : > { %s3356_s21 = smov %s1697_s24  ;;  %17 = sbr.rel (!%p15_p9) target bundleno = 3 (0x3), region = 75 }
 0x1db   :  { %1483 = vsyncpa [#allocation3], 1 }
 0x1dc   :  { %1485 = vsyncpa [#allocation3 + $0x1], 1 }

</bundles_post_ra>
